<compile_context>
chip_gen: v5e
topology: v5e:2x2
jax: 0.10.0
libtpu: 0.0.40
codegen_flags: <defaults>
</compile_context>

<pallas_src>
import functools
import math

import jax
import jax.numpy as jnp
from jax.experimental import pallas as pl
from jax.experimental.pallas import tpu as pltpu

_LANE = 128
_SUBLANE = 8


def _round_up(n, m):
    return ((n + m - 1) // m) * m


def _choose_batch_tile(batch):
    """Pick (tile_b, padded_batch): tile is a multiple of 8, <= 512.

    Cost heuristic: average of single-core work (all padded rows) and 2-core work
    (half the grid steps, v7x), plus ~64 "rows" of fixed overhead per grid step
    (~0.35us per step vs ~1.2 MFLOP of MXU work per row).  Minimizing this trades
    batch-padding waste against per-step overhead and rewards >= 2 steps on v7x.
    """
    b8 = _round_up(max(batch, _SUBLANE), _SUBLANE)
    best = None
    for tile in (512, 256, 128, 64, 32, 16, 8):
        if tile > b8:
            continue
        padded = _round_up(b8, tile)
        steps = padded // tile
        cost = 0.5 * (padded + tile * ((steps + 1) // 2)) + 64 * steps
        if best is None or cost < best[1]:
            best = (tile, cost, padded)
    return best[0], best[2]


def _rff_policy_kernel(x_ref, wfe_ref, bfe_ref, wrff_ref, brff_ref,
                       wout_ref, bout_ref, o_ref):
    """Fused: feature-extractor linear+ReLU -> RFF cos features -> output linear."""
    x = x_ref[...]                                                    # [TILE_B, D_in_p]  bf16

    # feature_transformer stand-in: Linear(D_in, 512) + ReLU (bf16 MXU, f32 accumulate)
    feat = jnp.dot(x, wfe_ref[...], preferred_element_type=jnp.float32) + bfe_ref[...]
    feat = jnp.maximum(feat, 0.0)                                     # [TILE_B, 512]  f32

    # Random Fourier Features: z = cos(feat @ W_rff + b_rff). Matmul in bf16 (f32 acc),
    # cos argument and cos itself stay f32 (no bf16 EUP on v5e).
    proj = jnp.dot(feat.astype(jnp.bfloat16), wrff_ref[...],
                   preferred_element_type=jnp.float32) + brff_ref[...]
    z = jnp.cos(proj)                                                 # [TILE_B, H_pad] f32
    # (rff_scale is pre-folded into W_out, so no extra VPU multiply here.)

    # output_linear (zero-initialized in __init__, kept general here); bf16 operands, f32 acc.
    o_ref[...] = jnp.dot(z.astype(jnp.bfloat16), wout_ref[...],
                         preferred_element_type=jnp.float32) + bout_ref[...]


def prepare_kernel_params(params):
    """One-time prep: lane-pad small dims to 128, fold rff_scale into W_out, cast weights to bf16."""
    d_in, ft_out = params["W_fe"].shape
    hidden, num_actions = params["W_out"].shape
    d_in_p = _round_up(d_in, _LANE)
    ft_out_p = _round_up(ft_out, _LANE)
    h_p = _round_up(hidden, _LANE)
    a_p = _round_up(num_actions, _LANE)

    W_fe = jnp.zeros((d_in_p, ft_out_p), jnp.float32).at[:d_in, :ft_out].set(params["W_fe"])
    b_fe = jnp.zeros((1, ft_out_p), jnp.float32).at[:, :ft_out].set(params["b_fe"])
    W_rff = jnp.zeros((ft_out_p, h_p), jnp.float32).at[:ft_out, :hidden].set(params["W_rff"])
    b_rff = jnp.zeros((1, h_p), jnp.float32).at[:, :hidden].set(params["b_rff"])
    # rff_scale folded into the (zero-padded) output weights; padded hidden rows stay exactly 0
    # so the cos(0)=1 lanes in the padded z columns never leak into the logits.
    W_out = jnp.zeros((h_p, a_p), jnp.float32).at[:hidden, :num_actions].set(
        params["rff_scale"] * params["W_out"])
    b_out = jnp.zeros((1, a_p), jnp.float32).at[:, :num_actions].set(params["b_out"])

    return dict(
        # all three matmuls: bf16 operands on the MXU, f32 accumulation
        W_fe=W_fe.astype(jnp.bfloat16),
        W_rff=W_rff.astype(jnp.bfloat16),
        W_out=W_out.astype(jnp.bfloat16),
        # biases / elementwise stay f32
        b_fe=b_fe, b_rff=b_rff, b_out=b_out,
        d_in=d_in, num_actions=num_actions,
    )


@functools.partial(jax.jit, static_argnames=("d_in", "num_actions"))
def _rff_policy_forward_impl(x_nchw, W_fe, b_fe, W_rff, b_rff, W_out, b_out, *,
                             d_in, num_actions):
    B = x_nchw.shape[0]
    d_in_p, ft_out_p = W_fe.shape
    h_p = W_rff.shape[1]
    a_p = W_out.shape[1]

    tile_b, b_pad = _choose_batch_tile(B)

    # NCHW flattened row-major to [B, C*H*W]; pad batch to a multiple of the batch tile and
    # the feature dim to a multiple of 128 lanes.  Being under the same jit as the pallas_call
    # lets XLA fuse reshape+cast+pad into a single HBM pass over x.
    x = x_nchw.reshape(B, -1).astype(jnp.bfloat16)
    x = jnp.pad(x, ((0, b_pad - B), (0, d_in_p - d_in)))

    grid = (b_pad // tile_b,)

    # Right-sized VMEM budget: single-buffered weights + double-buffered x/out tiles
    # + rough f32 staging for feat/proj/z, times 2x headroom, clamped to [16, 32] MiB.
    weight_bytes = sum(int(w.size) * w.dtype.itemsize
                       for w in (W_fe, b_fe, W_rff, b_rff, W_out, b_out))
    io_bytes = 2 * tile_b * d_in_p * 2 + 2 * tile_b * a_p * 4
    interm_bytes = 2 * tile_b * (ft_out_p + h_p) * 4
    vmem_limit = int(min(32 * 1024 * 1024,
                         max(16 * 1024 * 1024,
                             2 * (weight_bytes + io_bytes + interm_bytes))))

    flops = 2 * b_pad * (d_in_p * ft_out_p + ft_out_p * h_p + h_p * a_p)
    bytes_accessed = b_pad * d_in_p * 2 + weight_bytes + b_pad * a_p * 4

    const_map = lambda i: (0, 0)
    single = pl.Buffered(buffer_count=1)   # weights revisited every step: no second copy needed

    out = pl.pallas_call(
        _rff_policy_kernel,
        out_shape=jax.ShapeDtypeStruct((b_pad, a_p), jnp.float32),
        grid=grid,
        in_specs=[
            pl.BlockSpec((tile_b, d_in_p), lambda i: (i, 0)),          # streamed, double-buffered
            pl.BlockSpec((d_in_p, ft_out_p), const_map, pipeline_mode=single),
            pl.BlockSpec((1, ft_out_p), const_map, pipeline_mode=single),
            pl.BlockSpec((ft_out_p, h_p), const_map, pipeline_mode=single),
            pl.BlockSpec((1, h_p), const_map, pipeline_mode=single),
            pl.BlockSpec((h_p, a_p), const_map, pipeline_mode=single),
            pl.BlockSpec((1, a_p), const_map, pipeline_mode=single),
        ],
        out_specs=pl.BlockSpec((tile_b, a_p), lambda i: (i, 0)),       # lane-dense (128) store
        compiler_params=pltpu.CompilerParams(
            dimension_semantics=("parallel",),     # batch tiles shard across v7x's 2 TensorCores
            vmem_limit_bytes=vmem_limit,
        ),
        cost_estimate=pl.CostEstimate(
            flops=flops, transcendentals=b_pad * h_p, bytes_accessed=bytes_accessed),
    )(x, W_fe, b_fe, W_rff, b_rff, W_out, b_out)

    return out[:B, :num_actions]


def rff_policy_forward(x_nchw, kp):
    """Runs the fused RFFPolicy forward pass (batch-tiled, pipelined pallas_call)."""
    return _rff_policy_forward_impl(
        x_nchw, kp["W_fe"], kp["b_fe"], kp["W_rff"], kp["b_rff"],
        kp["W_out"], kp["b_out"], d_in=kp["d_in"], num_actions=kp["num_actions"])


def rff_policy_reference_matched(x_nchw, params):
    """Pure-JAX reference matching the kernel's precision (bf16 matmul operands, f32 acc/elementwise)."""
    B = x_nchw.shape[0]
    x = x_nchw.reshape(B, -1).astype(jnp.bfloat16)
    feat = jnp.dot(x, params["W_fe"].astype(jnp.bfloat16),
                   preferred_element_type=jnp.float32) + params["b_fe"]
    feat = jnp.maximum(feat, 0.0)
    proj = jnp.dot(feat.astype(jnp.bfloat16), params["W_rff"].astype(jnp.bfloat16),
                   preferred_element_type=jnp.float32) + params["b_rff"]
    z = jnp.cos(proj)
    w_out = (params["rff_scale"] * params["W_out"]).astype(jnp.bfloat16)
    return jnp.dot(z.astype(jnp.bfloat16), w_out,
                   preferred_element_type=jnp.float32) + params["b_out"]


def rff_policy_reference_f32(x_nchw, params):
    """End-to-end f32 reference mirroring the PyTorch module (measures true bf16 drift)."""
    B = x_nchw.shape[0]
    x = x_nchw.reshape(B, -1)
    feat = jnp.maximum(x @ params["W_fe"] + params["b_fe"], 0.0)
    z = params["rff_scale"] * jnp.cos(feat @ params["W_rff"] + params["b_rff"])
    return z @ params["W_out"] + params["b_out"]


def init_params(key, d_in, ft_out, hidden_dim, num_actions, bandwidth):
    k_fe, k_rw, k_ro = jax.random.split(key, 3)

    # feature_transformer Linear: xavier_uniform_ (weights_init_), zero bias.
    limit = math.sqrt(6.0 / (d_in + ft_out))
    W_fe = jax.random.uniform(k_fe, (d_in, ft_out), jnp.float32, -limit, limit)
    b_fe = jnp.zeros((1, ft_out), jnp.float32)

    # pyrfm RandomFourier(kernel='rbf', gamma=exp(bandwidth)):
    #   W ~ sqrt(2*gamma) * N(0,1),  offset ~ U(0, 2*pi),  scale = sqrt(2/hidden_dim)
    gamma = math.exp(bandwidth)
    W_rff = math.sqrt(2.0 * gamma) * jax.random.normal(k_rw, (ft_out, hidden_dim), jnp.float32)
    b_rff = jax.random.uniform(k_ro, (1, hidden_dim), jnp.float32, 0.0, 2.0 * math.pi)
    rff_scale = math.sqrt(2.0 / hidden_dim)

    # output_linear: weight.data.mul_(0.0), bias.data.mul_(0.0)  -> zeros.
    W_out = jnp.zeros((hidden_dim, num_actions), jnp.float32)
    b_out = jnp.zeros((1, num_actions), jnp.float32)

    return dict(W_fe=W_fe, b_fe=b_fe, W_rff=W_rff, b_rff=b_rff,
                W_out=W_out, b_out=b_out, rff_scale=rff_scale)


if __name__ == "__main__":
    # Small shapes consistent with the module: Atari-like NCHW frames -> 512 features
    B, C, H, W = 2, 4, 16, 16
    FT_OUT = 512          # self.ft_out
    HIDDEN_DIM = 32       # hidden_dim (RFF n_components)
    NUM_ACTIONS = 8       # num_actions
    BANDWIDTH = -1.0      # gamma = exp(bandwidth)

    key = jax.random.PRNGKey(0)
    k_x, k_p, k_w = jax.random.split(key, 3)

    x = jax.random.normal(k_x, (B, C, H, W), jnp.float32)
    params = init_params(k_p, C * H * W, FT_OUT, HIDDEN_DIM, NUM_ACTIONS, BANDWIDTH)

    # 1) Spec-faithful run (zero-initialized output head -> logits are exactly zero).
    kp = prepare_kernel_params(params)
    logits = jax.block_until_ready(rff_policy_forward(x, kp))
    assert logits.shape == (B, NUM_ACTIONS)
    ref_f32 = rff_policy_reference_f32(x, params)
    assert jnp.allclose(logits, ref_f32, atol=1e-5), "mismatch vs f32 reference (spec params)"

    # 2) Sanity check of the full matmul chain with a non-degenerate output head
    #    (the spec's zero init would otherwise make the comparison trivial).
    params_chk = dict(params)
    params_chk["W_out"] = 0.1 * jax.random.normal(k_w, (HIDDEN_DIM, NUM_ACTIONS), jnp.float32)
    params_chk["b_out"] = 0.1 * jnp.ones((1, NUM_ACTIONS), jnp.float32)
    kp_chk = prepare_kernel_params(params_chk)
    logits_chk = jax.block_until_ready(rff_policy_forward(x, kp_chk))

    # tight check vs a reference with identical bf16 operand precision ...
    ref_matched = rff_policy_reference_matched(x, params_chk)
    assert jnp.allclose(logits_chk, ref_matched, atol=2e-3, rtol=2e-3), \
        "mismatch vs precision-matched JAX reference"
    # ... and a looser check vs the true f32 path (bounds the bf16 drift vs the PyTorch module).
    ref_chk_f32 = rff_policy_reference_f32(x, params_chk)
    assert jnp.allclose(logits_chk, ref_chk_f32, atol=7.5e-2, rtol=5e-2), \
        "bf16 drift vs f32 reference exceeds tolerance"

    print("KERNEL_OK")
</pallas_src>

<mosaic_0001>
module attributes {stable_mosaic.version = 11 : i64} {
  func.func @_rff_policy_kernel(%arg0: i32, %arg1: memref<8x1024xbf16, #tpu.memory_space<vmem>>, %arg2: memref<1024x512xbf16, #tpu.memory_space<vmem>>, %arg3: memref<1x512xf32, #tpu.memory_space<vmem>>, %arg4: memref<512x128xbf16, #tpu.memory_space<vmem>>, %arg5: memref<1x128xf32, #tpu.memory_space<vmem>>, %arg6: memref<128x128xbf16, #tpu.memory_space<vmem>>, %arg7: memref<1x128xf32, #tpu.memory_space<vmem>>, %arg8: memref<8x128xf32, #tpu.memory_space<vmem>>) attributes {dimension_semantics = [#tpu.dimension_semantics<parallel>], iteration_bounds = array<i64: 1>, scalar_prefetch = 0 : i64, scratch_operands = 0 : i64, tpu.core_type = #tpu.core_type<tc>, window_params = [{transform_indices = @transform_0, window_bounds = array<i64: 8, 1024>}, {pipeline_mode = #tpu.pipeline_mode<synchronous>, transform_indices = @transform_1, window_bounds = array<i64: 1024, 512>}, {pipeline_mode = #tpu.pipeline_mode<synchronous>, transform_indices = @transform_2, window_bounds = array<i64: 1, 512>}, {pipeline_mode = #tpu.pipeline_mode<synchronous>, transform_indices = @transform_3, window_bounds = array<i64: 512, 128>}, {pipeline_mode = #tpu.pipeline_mode<synchronous>, transform_indices = @transform_4, window_bounds = array<i64: 1, 128>}, {pipeline_mode = #tpu.pipeline_mode<synchronous>, transform_indices = @transform_5, window_bounds = array<i64: 128, 128>}, {pipeline_mode = #tpu.pipeline_mode<synchronous>, transform_indices = @transform_6, window_bounds = array<i64: 1, 128>}, {transform_indices = @transform_7, window_bounds = array<i64: 8, 128>}]} {
    %c0 = arith.constant 0 : index
    %c0_0 = arith.constant 0 : index
    %0 = vector.load %arg1[%c0, %c0_0] : memref<8x1024xbf16, #tpu.memory_space<vmem>>, vector<8x1024xbf16>
    %c0_1 = arith.constant 0 : index
    %c0_2 = arith.constant 0 : index
    %1 = vector.load %arg2[%c0_1, %c0_2] : memref<1024x512xbf16, #tpu.memory_space<vmem>>, vector<1024x512xbf16>
    %cst = arith.constant dense<0.000000e+00> : vector<8x512xf32>
    %2 = tpu.matmul %0, %1, %cst {dimension_numbers = #tpu.dot_dimension_numbers<[1], [0], [0], [1], [0, 0, 1, 1], [], []>} : vector<8x1024xbf16>, vector<1024x512xbf16>, vector<8x512xf32> -> vector<8x512xf32>
    %c0_3 = arith.constant 0 : index
    %c0_4 = arith.constant 0 : index
    %3 = vector.load %arg3[%c0_3, %c0_4] : memref<1x512xf32, #tpu.memory_space<vmem>>, vector<1x512xf32>
    %4 = vector.broadcast %3 : vector<1x512xf32> to vector<8x512xf32>
    %5 = arith.addf %2, %4 : vector<8x512xf32>
    %cst_5 = arith.constant 0.000000e+00 : f32
    %6 = vector.broadcast %cst_5 : f32 to vector<8x512xf32>
    %7 = arith.maximumf %5, %6 : vector<8x512xf32>
    %8 = arith.truncf %7 : vector<8x512xf32> to vector<8x512xbf16>
    %c0_6 = arith.constant 0 : index
    %c0_7 = arith.constant 0 : index
    %9 = vector.load %arg4[%c0_6, %c0_7] : memref<512x128xbf16, #tpu.memory_space<vmem>>, vector<512x128xbf16>
    %cst_8 = arith.constant dense<0.000000e+00> : vector<8x128xf32>
    %10 = tpu.matmul %8, %9, %cst_8 {dimension_numbers = #tpu.dot_dimension_numbers<[1], [0], [0], [1], [0, 0, 1, 1], [], []>} : vector<8x512xbf16>, vector<512x128xbf16>, vector<8x128xf32> -> vector<8x128xf32>
    %c0_9 = arith.constant 0 : index
    %c0_10 = arith.constant 0 : index
    %11 = vector.load %arg5[%c0_9, %c0_10] : memref<1x128xf32, #tpu.memory_space<vmem>>, vector<1x128xf32>
    %12 = vector.broadcast %11 : vector<1x128xf32> to vector<8x128xf32>
    %13 = arith.addf %10, %12 : vector<8x128xf32>
    %14 = math.cos %13 : vector<8x128xf32>
    %15 = arith.truncf %14 : vector<8x128xf32> to vector<8x128xbf16>
    %c0_11 = arith.constant 0 : index
    %c0_12 = arith.constant 0 : index
    %16 = vector.load %arg6[%c0_11, %c0_12] : memref<128x128xbf16, #tpu.memory_space<vmem>>, vector<128x128xbf16>
    %cst_13 = arith.constant dense<0.000000e+00> : vector<8x128xf32>
    %17 = tpu.matmul %15, %16, %cst_13 {dimension_numbers = #tpu.dot_dimension_numbers<[1], [0], [0], [1], [0, 0, 1, 1], [], []>} : vector<8x128xbf16>, vector<128x128xbf16>, vector<8x128xf32> -> vector<8x128xf32>
    %c0_14 = arith.constant 0 : index
    %c0_15 = arith.constant 0 : index
    %18 = vector.load %arg7[%c0_14, %c0_15] : memref<1x128xf32, #tpu.memory_space<vmem>>, vector<1x128xf32>
    %19 = vector.broadcast %18 : vector<1x128xf32> to vector<8x128xf32>
    %20 = arith.addf %17, %19 : vector<8x128xf32>
    %c0_16 = arith.constant 0 : index
    %c0_17 = arith.constant 0 : index
    %21 = vector.load %arg8[%c0_16, %c0_17] : memref<8x128xf32, #tpu.memory_space<vmem>>, vector<8x128xf32>
    tpu.vector_store %arg8[%c0_16, %c0_17], %20 {strides = array<i32>} : memref<8x128xf32, #tpu.memory_space<vmem>>, vector<8x128xf32>,
    return
  }
  func.func @transform_0(%arg0: i32) -> (i32, i32) {
    %c0_i32 = arith.constant 0 : i32
    %c0_i32_0 = arith.constant 0 : i32
    return %arg0, %c0_i32 : i32, i32
  }
  func.func @transform_1(%arg0: i32) -> (i32, i32) {
    %c0_i32 = arith.constant 0 : i32
    %c0_i32_0 = arith.constant 0 : i32
    %c0_i32_1 = arith.constant 0 : i32
    return %c0_i32, %c0_i32_0 : i32, i32
  }
  func.func @transform_2(%arg0: i32) -> (i32, i32) {
    %c0_i32 = arith.constant 0 : i32
    %c0_i32_0 = arith.constant 0 : i32
    %c0_i32_1 = arith.constant 0 : i32
    return %c0_i32, %c0_i32_0 : i32, i32
  }
  func.func @transform_3(%arg0: i32) -> (i32, i32) {
    %c0_i32 = arith.constant 0 : i32
    %c0_i32_0 = arith.constant 0 : i32
    %c0_i32_1 = arith.constant 0 : i32
    return %c0_i32, %c0_i32_0 : i32, i32
  }
  func.func @transform_4(%arg0: i32) -> (i32, i32) {
    %c0_i32 = arith.constant 0 : i32
    %c0_i32_0 = arith.constant 0 : i32
    %c0_i32_1 = arith.constant 0 : i32
    return %c0_i32, %c0_i32_0 : i32, i32
  }
  func.func @transform_5(%arg0: i32) -> (i32, i32) {
    %c0_i32 = arith.constant 0 : i32
    %c0_i32_0 = arith.constant 0 : i32
    %c0_i32_1 = arith.constant 0 : i32
    return %c0_i32, %c0_i32_0 : i32, i32
  }
  func.func @transform_6(%arg0: i32) -> (i32, i32) {
    %c0_i32 = arith.constant 0 : i32
    %c0_i32_0 = arith.constant 0 : i32
    %c0_i32_1 = arith.constant 0 : i32
    return %c0_i32, %c0_i32_0 : i32, i32
  }
  func.func @transform_7(%arg0: i32) -> (i32, i32) {
    %c0_i32 = arith.constant 0 : i32
    %c0_i32_0 = arith.constant 0 : i32
    return %arg0, %c0_i32 : i32, i32
  }
}

</mosaic_0001>

<bundles_post_ra>
// kernel: _rff_policy_forward_impl.1
= control target key start
LH: loop header
LB: loop body
LE: loop exit
PB: predicated region body
PF: predicated region fallthrough
CT: control target
= control target key end

     0   :  { %12 = vsyncpa [#allocation3], 0  ;;  %s4480_s0 = inlined_call_operand.vmem [shape: bf16[8,1024], index: 0, kind: input, shape index: {}]   ;;  %s4481_s1 = inlined_call_operand.hbm [shape: bf16[1024,512], index: 1, kind: input, shape index: {}]   ;;  %s4482_s2 = inlined_call_operand.vmem [shape: f32[1,512], index: 2, kind: input, shape index: {}]   ;;  %s4483_s3 = inlined_call_operand.vmem [shape: bf16[512,128], index: 3, kind: input, shape index: {}]   ;;  %s4484_s4 = inlined_call_operand.vmem [shape: f32[1,128], index: 4, kind: input, shape index: {}]   ;;  %s4485_s5 = inlined_call_operand.hbm [shape: bf16[128,128], index: 5, kind: input, shape index: {}]   ;;  %s4486_s6 = inlined_call_operand.vmem [shape: f32[1,128], index: 6, kind: input, shape index: {}]   ;;  %s4487_s7 = inlined_call_operand.vmem [shape: f32[8,128], index: 7, kind: output, shape index: {}]  }
   0x1   :  { %s20_s26 = sshll.u32 %s4481_s1, 4  ;;  %s21_s26 = int_to_ptr.hbm [resolvable:$true] %s20_s26 }
   0x2   :  { %13 = vsyncpa [#allocation5], 0  ;;  %s4165_s27 = smov [#allocation2]   ;;  %s39_s8 = sshll.u32 %s4485_s5, 4  ;;  %s40_s8 = int_to_ptr.hbm [resolvable:$true] %s39_s8 }
   0x3   :  { %s22_s28 = sshll.u32 %s4165_s27, 4  ;;  %s4166_s9 = smov 256   ;;  %s23_s28 = int_to_ptr.vmem [resolvable:$true] %s22_s28 }
   0x4   :  { %s4167_s10 = smov 16   ;;  %s4168_s11 = smov [#allocation4]  }
   0x5   :  { %28 = dma.hbm_to_vmem [thread:$0]  %s21_s26, 32768, %s23_s28, [#allocation3], %s4166_s9, %s4166_s9, %s4167_s10  }
   0x6   :  { %s41_s12 = sshll.u32 %s4168_s11, 4  ;;  %s4169_s13 = smov 64   ;;  %s42_s12 = int_to_ptr.vmem [resolvable:$true] %s41_s12 }
   0x7   :  { %s4170_s14 = smov 4  }
   0x8   :  { %47 = dma.hbm_to_vmem [thread:$0]  %s40_s8, 1024, %s42_s12, [#allocation5], %s4169_s13, %s4169_s13, %s4170_s14  }
   0x9   :  { %4161 = dma.done.wait [#allocation3], 32768  }
   0xa   :  { %4162 = vsyncadd [#allocation3], 4294934528 }
   0xb   :  { %4163 = dma.done.wait [#allocation5], 1024  }
   0xc   :  { %4164 = vsyncadd [#allocation5], 4294966272  ;;  %v2729_v0 = vld [vmem:[#allocation2 + $0xe0] sm:$0xf]  ;;  %v3832_v1 = vld [vmem:[#allocation2 + $0xec] sm:$0xf0] }
   0xd   :  { %v2857_v2 = vld [vmem:[#allocation2 + $0x1e0] sm:$0xf]  ;;  %v2730_v3 = vor.u32 %v3832_v1, %v2729_v0  ;;  %v3864_v4 = vld [vmem:[#allocation2 + $0x1ec] sm:$0xf0] }
   0xe   :  { %v2985_v5 = vld [vmem:[#allocation2 + $0x2e0] sm:$0xf]  ;;  %v3896_v6 = vld [vmem:[#allocation2 + $0x2ec] sm:$0xf0]  ;;  %v2858_v7 = vor.u32 %v3864_v4, %v2857_v2 }
   0xf   :  { %v2986_v8 = vor.u32 %v3896_v6, %v2985_v5  ;;  %v3113_v9 = vld [vmem:[#allocation2 + $0x3e0] sm:$0xf]  ;;  %v3928_v10 = vld [vmem:[#allocation2 + $0x3ec] sm:$0xf0]  ;;  %1636 = vmatpush.bf16.msra.mxu0 %v2730_v3 }
  0x10   :  { %v2713_v11 = vld [vmem:[#allocation2 + $0xc0] sm:$0xf]  ;;  %v3114_v12 = vor.u32 %v3928_v10, %v3113_v9  ;;  %v3828_v13 = vld [vmem:[#allocation2 + $0xcc] sm:$0xf0]  ;;  %1649 = vmatpush.bf16.msra.mxu1 %v2858_v7 }
  0x11   :  { %v2841_v14 = vld [vmem:[#allocation2 + $0x1c0] sm:$0xf]  ;;  %v3860_v15 = vld [vmem:[#allocation2 + $0x1cc] sm:$0xf0]  ;;  %1662 = vmatpush.bf16.msra.mxu2 %v2986_v8  ;;  %v2714_v16 = vor.u32 %v3828_v13, %v2713_v11 }
  0x12   :  { %v2842_v17 = vor.u32 %v3860_v15, %v2841_v14  ;;  %v2969_v18 = vld [vmem:[#allocation2 + $0x2c0] sm:$0xf]  ;;  %v3892_v19 = vld [vmem:[#allocation2 + $0x2cc] sm:$0xf0]  ;;  %1675 = vmatpush.bf16.msra.mxu3 %v3114_v12 }
  0x13   :  { %v3097_v20 = vld [vmem:[#allocation2 + $0x3c0] sm:$0xf]  ;;  %v2970_v21 = vor.u32 %v3892_v19, %v2969_v18  ;;  %v3924_v22 = vld [vmem:[#allocation2 + $0x3cc] sm:$0xf0]  ;;  %1637 = vmatpush.bf16.msra.mxu0 %v2714_v16 }
  0x14   :  { %v2697_v23 = vld [vmem:[#allocation2 + $0xa0] sm:$0xf]  ;;  %v3824_v24 = vld [vmem:[#allocation2 + $0xac] sm:$0xf0]  ;;  %v3098_v25 = vor.u32 %v3924_v22, %v3097_v20  ;;  %1650 = vmatpush.bf16.msra.mxu1 %v2842_v17 }
  0x15   :  { %v2825_v26 = vld [vmem:[#allocation2 + $0x1a0] sm:$0xf]  ;;  %v3856_v27 = vld [vmem:[#allocation2 + $0x1ac] sm:$0xf0]  ;;  %v2698_v29 = vor.u32 %v3824_v24, %v2697_v23  ;;  %1663 = vmatpush.bf16.msra.mxu2 %v2970_v21 }
  0x16   :  { %v2953_v28 = vld [vmem:[#allocation2 + $0x2a0] sm:$0xf]  ;;  %v3888_v30 = vld [vmem:[#allocation2 + $0x2ac] sm:$0xf0]  ;;  %v2826_v33 = vor.u32 %v3856_v27, %v2825_v26  ;;  %1676 = vmatpush.bf16.msra.mxu3 %v3098_v25 }
  0x17   :  { %v3081_v31 = vld [vmem:[#allocation2 + $0x3a0] sm:$0xf]  ;;  %v3920_v32 = vld [vmem:[#allocation2 + $0x3ac] sm:$0xf0]  ;;  %v2954_v34 = vor.u32 %v3888_v30, %v2953_v28  ;;  %1638 = vmatpush.bf16.msra.mxu0 %v2698_v29 }
  0x18   :  { %v2681_v35 = vld [vmem:[#allocation2 + $0x80] sm:$0xf]  ;;  %v3820_v36 = vld [vmem:[#allocation2 + $0x8c] sm:$0xf0]  ;;  %v3082_v38 = vor.u32 %v3920_v32, %v3081_v31  ;;  %1651 = vmatpush.bf16.msra.mxu1 %v2826_v33 }
  0x19   :  { %v2809_v37 = vld [vmem:[#allocation2 + $0x180] sm:$0xf]  ;;  %v3852_v39 = vld [vmem:[#allocation2 + $0x18c] sm:$0xf0]  ;;  %v2682_v44 = vor.u32 %v3820_v36, %v2681_v35  ;;  %1664 = vmatpush.bf16.msra.mxu2 %v2954_v34 }
  0x1a   :  { %v2937_v40 = vld [vmem:[#allocation2 + $0x280] sm:$0xf]  ;;  %v3884_v41 = vld [vmem:[#allocation2 + $0x28c] sm:$0xf0]  ;;  %v2810_v45 = vor.u32 %v3852_v39, %v2809_v37  ;;  %1677 = vmatpush.bf16.msra.mxu3 %v3082_v38 }
  0x1b   :  { %v3065_v42 = vld [vmem:[#allocation2 + $0x380] sm:$0xf]  ;;  %v3916_v43 = vld [vmem:[#allocation2 + $0x38c] sm:$0xf0]  ;;  %v2938_v46 = vor.u32 %v3884_v41, %v2937_v40  ;;  %1639 = vmatpush.bf16.msra.mxu0 %v2682_v44 }
  0x1c   :  { %v2665_v47 = vld [vmem:[#allocation2 + $0x60] sm:$0xf]  ;;  %v3816_v48 = vld [vmem:[#allocation2 + $0x6c] sm:$0xf0]  ;;  %v3066_v50 = vor.u32 %v3916_v43, %v3065_v42  ;;  %1652 = vmatpush.bf16.msra.mxu1 %v2810_v45 }
  0x1d   :  { %v2793_v49 = vld [vmem:[#allocation2 + $0x160] sm:$0xf]  ;;  %v3848_v51 = vld [vmem:[#allocation2 + $0x16c] sm:$0xf0]  ;;  %v2666_v56 = vor.u32 %v3816_v48, %v2665_v47  ;;  %1665 = vmatpush.bf16.msra.mxu2 %v2938_v46 }
  0x1e   :  { %v2921_v52 = vld [vmem:[#allocation2 + $0x260] sm:$0xf]  ;;  %v3880_v53 = vld [vmem:[#allocation2 + $0x26c] sm:$0xf0]  ;;  %v2794_v57 = vor.u32 %v3848_v51, %v2793_v49  ;;  %1678 = vmatpush.bf16.msra.mxu3 %v3066_v50 }
  0x1f   :  { %v3049_v54 = vld [vmem:[#allocation2 + $0x360] sm:$0xf]  ;;  %v3912_v55 = vld [vmem:[#allocation2 + $0x36c] sm:$0xf0]  ;;  %v2922_v58 = vor.u32 %v3880_v53, %v2921_v52  ;;  %1640 = vmatpush.bf16.msra.mxu0 %v2666_v56 }
  0x20   :  { %v2649_v59 = vld [vmem:[#allocation2 + $0x40] sm:$0xf]  ;;  %v3812_v60 = vld [vmem:[#allocation2 + $0x4c] sm:$0xf0]  ;;  %v3050_v62 = vor.u32 %v3912_v55, %v3049_v54  ;;  %1653 = vmatpush.bf16.msra.mxu1 %v2794_v57 }
  0x21   :  { %v2777_v61 = vld [vmem:[#allocation2 + $0x140] sm:$0xf]  ;;  %v3844_v63 = vld [vmem:[#allocation2 + $0x14c] sm:$0xf0]  ;;  %v2650_v4 = vor.u32 %v3812_v60, %v2649_v59  ;;  %1666 = vmatpush.bf16.msra.mxu2 %v2922_v58 }
  0x22   :  { %v2905_v0 = vld [vmem:[#allocation2 + $0x240] sm:$0xf]  ;;  %v3876_v1 = vld [vmem:[#allocation2 + $0x24c] sm:$0xf0]  ;;  %v2778_v5 = vor.u32 %v3844_v63, %v2777_v61  ;;  %1679 = vmatpush.bf16.msra.mxu3 %v3050_v62 }
  0x23   :  { %v3033_v2 = vld [vmem:[#allocation2 + $0x340] sm:$0xf]  ;;  %v3908_v3 = vld [vmem:[#allocation2 + $0x34c] sm:$0xf0]  ;;  %v2906_v6 = vor.u32 %v3876_v1, %v2905_v0  ;;  %1641 = vmatpush.bf16.msra.mxu0 %v2650_v4 }
  0x24   :  { %v2633_v7 = vld [vmem:[#allocation2 + $0x20] sm:$0xf]  ;;  %v3808_v8 = vld [vmem:[#allocation2 + $0x2c] sm:$0xf0]  ;;  %v3034_v10 = vor.u32 %v3908_v3, %v3033_v2  ;;  %1654 = vmatpush.bf16.msra.mxu1 %v2778_v5  ;;  %v59_v2 = vld [vmem:[%s4480_s0 + $0x8] sm:$0xff] }
  0x25   :  { %v2761_v9 = vld [vmem:[#allocation2 + $0x120] sm:$0xf]  ;;  %v3840_v11 = vld [vmem:[#allocation2 + $0x12c] sm:$0xf0]  ;;  %v2634_v16 = vor.u32 %v3808_v8, %v2633_v7  ;;  %1667 = vmatpush.bf16.msra.mxu2 %v2906_v6  ;;  %v334_v8 = vunpack.c.l.b16 %v59_v2 }
  0x26   :  { %v2889_v12 = vld [vmem:[#allocation2 + $0x220] sm:$0xf]  ;;  %v3872_v13 = vld [vmem:[#allocation2 + $0x22c] sm:$0xf0]  ;;  %v2762_v19 = vor.u32 %v3840_v11, %v2761_v9  ;;  %1680 = vmatpush.bf16.msra.mxu3 %v3034_v10  ;;  %v335_v10 = vunpack.c.h.b16 %v59_v2 }
  0x27   :  { %v3017_v14 = vld [vmem:[#allocation2 + $0x320] sm:$0xf]  ;;  %v3904_v15 = vld [vmem:[#allocation2 + $0x32c] sm:$0xf0]  ;;  %v2890_v20 = vor.u32 %v3872_v13, %v2889_v12  ;;  %1642 = vmatpush.bf16.msra.mxu0 %v2634_v16 }
  0x28   :  { %v2617_v17 = vld [vmem:[#allocation2] sm:$0xf]  ;;  %v3804_v18 = vld [vmem:[#allocation2 + $0xc] sm:$0xf0]  ;;  %v3018_v24 = vor.u32 %v3904_v15, %v3017_v14  ;;  %1655 = vmatpush.bf16.msra.mxu1 %v2762_v19 }
  0x29   :  { %v2745_v21 = vld [vmem:[#allocation2 + $0x100] sm:$0xf]  ;;  %v3836_v22 = vld [vmem:[#allocation2 + $0x10c] sm:$0xf0]  ;;  %v2618_v31 = vor.u32 %v3804_v18, %v2617_v17  ;;  %1668 = vmatpush.bf16.msra.mxu2 %v2890_v20  ;;  %v4230_v18 = vpack.c.b16 %v334_v8, %v334_v8  ;;  %v4234_v20 = vpack.c.b16 %v335_v10, %v335_v10  ;;  %v3830_v8 = vld [vmem:[#allocation2 + $0xe4] sm:$0xf] }
  0x2a   :  { %v2873_v23 = vld [vmem:[#allocation2 + $0x200] sm:$0xf]  ;;  %v3868_v25 = vld [vmem:[#allocation2 + $0x20c] sm:$0xf0]  ;;  %v2746_v35 = vor.u32 %v3836_v22, %v2745_v21  ;;  %1681 = vmatpush.bf16.msra.mxu3 %v3018_v24  ;;  %v3862_v10 = vld [vmem:[#allocation2 + $0x1e4] sm:$0xf] }
  0x2b   :  { %v3001_v26 = vld [vmem:[#allocation2 + $0x300] sm:$0xf]  ;;  %v3900_v27 = vld [vmem:[#allocation2 + $0x30c] sm:$0xf0]  ;;  %v2874_v36 = vor.u32 %v3868_v25, %v2873_v23  ;;  %1643 = vmatpush.bf16.msra.mxu0 %v2618_v31 }
  0x2c   :  { %v3241_v28 = vld [vmem:[#allocation2 + $0x4e0] sm:$0xf]  ;;  %v3960_v29 = vld [vmem:[#allocation2 + $0x4ec] sm:$0xf0]  ;;  %v3002_v39 = vor.u32 %v3900_v27, %v3001_v26  ;;  %1656 = vmatpush.bf16.msra.mxu1 %v2746_v35 }
  0x2d   :  { %v3369_v30 = vld [vmem:[#allocation2 + $0x5e0] sm:$0xf]  ;;  %v3992_v32 = vld [vmem:[#allocation2 + $0x5ec] sm:$0xf0]  ;;  %v3242_v40 = vor.u32 %v3960_v29, %v3241_v28  ;;  %1669 = vmatpush.bf16.msra.mxu2 %v2874_v36 }
  0x2e   :  { %v3497_v33 = vld [vmem:[#allocation2 + $0x6e0] sm:$0xf]  ;;  %v4024_v34 = vld [vmem:[#allocation2 + $0x6ec] sm:$0xf0]  ;;  %v3370_v41 = vor.u32 %v3992_v32, %v3369_v30  ;;  %1682 = vmatpush.bf16.msra.mxu3 %v3002_v39 }
  0x2f   :  { %v3625_v37 = vld [vmem:[#allocation2 + $0x7e0] sm:$0xf]  ;;  %v4056_v38 = vld [vmem:[#allocation2 + $0x7ec] sm:$0xf0]  ;;  %v3498_v42 = vor.u32 %v4024_v34, %v3497_v33  ;;  %1688 = vmatpush.bf16.msrb.mxu0 %v3242_v40 }
  0x30   :  { %v3225_v43 = vld [vmem:[#allocation2 + $0x4c0] sm:$0xf]  ;;  %v3956_v44 = vld [vmem:[#allocation2 + $0x4cc] sm:$0xf0]  ;;  %v3626_v46 = vor.u32 %v4056_v38, %v3625_v37  ;;  %1701 = vmatpush.bf16.msrb.mxu1 %v3370_v41  ;;  %1670 = vmatmul.bf16.vlgmr.msra.gmra.mxu2 %v4230_v18 }
  0x31   :  { %v3353_v45 = vld [vmem:[#allocation2 + $0x5c0] sm:$0xf]  ;;  %v3988_v47 = vld [vmem:[#allocation2 + $0x5cc] sm:$0xf0]  ;;  %v3226_v52 = vor.u32 %v3956_v44, %v3225_v43  ;;  %1714 = vmatpush.bf16.msrb.mxu2 %v3498_v42  ;;  %1683 = vmatmul.bf16.vlgmr.msra.gmra.mxu3 %v4234_v20 }
  0x32   :  { %v3481_v48 = vld [vmem:[#allocation2 + $0x6c0] sm:$0xf]  ;;  %v4020_v49 = vld [vmem:[#allocation2 + $0x6cc] sm:$0xf0]  ;;  %v3354_v54 = vor.u32 %v3988_v47, %v3353_v45  ;;  %1727 = vmatpush.bf16.msrb.mxu3 %v3626_v46 }
  0x33   :  { %v3609_v50 = vld [vmem:[#allocation2 + $0x7c0] sm:$0xf]  ;;  %v4052_v51 = vld [vmem:[#allocation2 + $0x7cc] sm:$0xf0]  ;;  %v3482_v55 = vor.u32 %v4020_v49, %v3481_v48  ;;  %1689 = vmatpush.bf16.msrb.mxu0 %v3226_v52 }
  0x34   :  { %v3209_v53 = vld [vmem:[#allocation2 + $0x4a0] sm:$0xf]  ;;  %v3952_v56 = vld [vmem:[#allocation2 + $0x4ac] sm:$0xf0]  ;;  %v3610_v59 = vor.u32 %v4052_v51, %v3609_v50  ;;  %1702 = vmatpush.bf16.msrb.mxu1 %v3354_v54 }
  0x35   :  { %v3337_v57 = vld [vmem:[#allocation2 + $0x5a0] sm:$0xf]  ;;  %v3984_v58 = vld [vmem:[#allocation2 + $0x5ac] sm:$0xf0]  ;;  %v3210_v0 = vor.u32 %v3952_v56, %v3209_v53  ;;  %1715 = vmatpush.bf16.msrb.mxu2 %v3482_v55 }
  0x36   :  { %v3465_v60 = vld [vmem:[#allocation2 + $0x6a0] sm:$0xf]  ;;  %v4016_v61 = vld [vmem:[#allocation2 + $0x6ac] sm:$0xf0]  ;;  %v3338_v1 = vor.u32 %v3984_v58, %v3337_v57  ;;  %1728 = vmatpush.bf16.msrb.mxu3 %v3610_v59 }
  0x37   :  { %v3593_v62 = vld [vmem:[#allocation2 + $0x7a0] sm:$0xf]  ;;  %v4048_v63 = vld [vmem:[#allocation2 + $0x7ac] sm:$0xf0]  ;;  %v3466_v4 = vor.u32 %v4016_v61, %v3465_v60  ;;  %1690 = vmatpush.bf16.msrb.mxu0 %v3210_v0 }
  0x38   :  { %v58_v3 = vld [vmem:[%s4480_s0] sm:$0xff]  ;;  %v3948_v6 = vld [vmem:[#allocation2 + $0x48c] sm:$0xf0]  ;;  %v3594_v11 = vor.u32 %v4048_v63, %v3593_v62  ;;  %1703 = vmatpush.bf16.msrb.mxu1 %v3338_v1 }
  0x39   :  { %v3193_v5 = vld [vmem:[#allocation2 + $0x480] sm:$0xf]  ;;  %v332_v9 = vunpack.c.l.b16 %v58_v3  ;;  %v3980_v12 = vld [vmem:[#allocation2 + $0x58c] sm:$0xf0]  ;;  %v333_v15 = vunpack.c.h.b16 %v58_v3  ;;  %1716 = vmatpush.bf16.msrb.mxu2 %v3466_v4  ;;  %v61_v3 = vld [vmem:[%s4480_s0 + $0x18] sm:$0xff] }
  0x3a   :  { %v3321_v7 = vld [vmem:[#allocation2 + $0x580] sm:$0xf]  ;;  %v4012_v14 = vld [vmem:[#allocation2 + $0x68c] sm:$0xf0]  ;;  %v3194_v21 = vor.u32 %v3948_v6, %v3193_v5  ;;  %1729 = vmatpush.bf16.msrb.mxu3 %v3594_v11 }
  0x3b   :  { %v3449_v13 = vld [vmem:[#allocation2 + $0x680] sm:$0xf]  ;;  %v4044_v17 = vld [vmem:[#allocation2 + $0x78c] sm:$0xf0]  ;;  %v4232_v19 = vpack.c.b16 %v332_v9, %v332_v9  ;;  %v4236_v22 = vpack.c.b16 %v333_v15, %v333_v15  ;;  %v3322_v23 = vor.u32 %v3980_v12, %v3321_v7  ;;  %v2731_v9 = vld [vmem:[#allocation2 + $0xf0] sm:$0xf0]  ;;  %v338_v15 = vunpack.c.l.b16 %v61_v3 }
  0x3c   :  { %v3577_v16 = vld [vmem:[#allocation2 + $0x780] sm:$0xf]  ;;  %v3450_v24 = vor.u32 %v4012_v14, %v3449_v13  ;;  %v3944_v26 = vld [vmem:[#allocation2 + $0x46c] sm:$0xf0]  ;;  %1691 = vmatpush.bf16.msrb.mxu0 %v3194_v21  ;;  %v2859_v12 = vld [vmem:[#allocation2 + $0x1f0] sm:$0xf0] }
  0x3d   :  { %v3177_v25 = vld [vmem:[#allocation2 + $0x460] sm:$0xf]  ;;  %v3578_v28 = vor.u32 %v4044_v17, %v3577_v16  ;;  %v3976_v29 = vld [vmem:[#allocation2 + $0x56c] sm:$0xf0]  ;;  %1644 = vmatmul.bf16.vlgmr.msra.gmra.mxu0 %v4232_v19  ;;  %1657 = vmatmul.bf16.vlgmr.msra.gmra.mxu1 %v4236_v22  ;;  %v3894_v13 = vld [vmem:[#allocation2 + $0x2e4] sm:$0xf] }
  0x3e   :  { %v3305_v27 = vld [vmem:[#allocation2 + $0x560] sm:$0xf]  ;;  %v4008_v31 = vld [vmem:[#allocation2 + $0x66c] sm:$0xf0]  ;;  %v3178_v34 = vor.u32 %v3944_v26, %v3177_v25  ;;  %1704 = vmatpush.bf16.msrb.mxu1 %v3322_v23  ;;  %1717 = vmatpush.bf16.msrb.mxu2 %v3450_v24  ;;  %v2987_v14 = vld [vmem:[#allocation2 + $0x2f0] sm:$0xf0]  ;;  %v339_v25 = vunpack.c.h.b16 %v61_v3 }
  0x3f   :  { %v3433_v30 = vld [vmem:[#allocation2 + $0x660] sm:$0xf]  ;;  %v4040_v33 = vld [vmem:[#allocation2 + $0x76c] sm:$0xf0]  ;;  %v3306_v35 = vor.u32 %v3976_v29, %v3305_v27  ;;  %1730 = vmatpush.bf16.msrb.mxu3 %v3578_v28  ;;  %v3926_v21 = vld [vmem:[#allocation2 + $0x3e4] sm:$0xf]  ;;  %v2734_v27 = vor.u32 %v3830_v8, %v2731_v9  ;;  %v2862_v29 = vor.u32 %v3862_v10, %v2859_v12 }
  0x40   :  { %v3561_v32 = vld [vmem:[#allocation2 + $0x760] sm:$0xf]  ;;  %v3434_v36 = vor.u32 %v4008_v31, %v3433_v30  ;;  %v3940_v38 = vld [vmem:[#allocation2 + $0x44c] sm:$0xf0]  ;;  %1692 = vmatpush.bf16.msrb.mxu0 %v3178_v34  ;;  %v3115_v23 = vld [vmem:[#allocation2 + $0x3f0] sm:$0xf0]  ;;  %v2990_v30 = vor.u32 %v3894_v13, %v2987_v14 }
  0x41   :  { %v3161_v37 = vld [vmem:[#allocation2 + $0x440] sm:$0xf]  ;;  %v3562_v40 = vor.u32 %v4040_v33, %v3561_v32  ;;  %v3972_v41 = vld [vmem:[#allocation2 + $0x54c] sm:$0xf0]  ;;  %v3826_v31 = vld [vmem:[#allocation2 + $0xc4] sm:$0xf]  ;;  %v3118_v34 = vor.u32 %v3926_v21, %v3115_v23 }
  0x42   :  { %v3289_v39 = vld [vmem:[#allocation2 + $0x540] sm:$0xf]  ;;  %v4004_v43 = vld [vmem:[#allocation2 + $0x64c] sm:$0xf0]  ;;  %v3162_v46 = vor.u32 %v3940_v38, %v3161_v37  ;;  %1705 = vmatpush.bf16.msrb.mxu1 %v3306_v35  ;;  %1718 = vmatpush.bf16.msrb.mxu2 %v3434_v36  ;;  %v2715_v32 = vld [vmem:[#allocation2 + $0xd0] sm:$0xf0]  ;;  %v4248_v38 = vpack.c.b16 %v338_v15, %v338_v15 }
  0x43   :  { %v3417_v42 = vld [vmem:[#allocation2 + $0x640] sm:$0xf]  ;;  %v4036_v45 = vld [vmem:[#allocation2 + $0x74c] sm:$0xf0]  ;;  %v3290_v47 = vor.u32 %v3972_v41, %v3289_v39  ;;  %1731 = vmatpush.bf16.msrb.mxu3 %v3562_v40  ;;  %v3858_v33 = vld [vmem:[#allocation2 + $0x1c4] sm:$0xf] }
  0x44   :  { %v3545_v44 = vld [vmem:[#allocation2 + $0x740] sm:$0xf]  ;;  %v3418_v48 = vor.u32 %v4004_v43, %v3417_v42  ;;  %v3936_v50 = vld [vmem:[#allocation2 + $0x42c] sm:$0xf0]  ;;  %1693 = vmatpush.bf16.msrb.mxu0 %v3162_v46  ;;  %v2843_v35 = vld [vmem:[#allocation2 + $0x1d0] sm:$0xf0]  ;;  %v4252_v42 = vpack.c.b16 %v339_v25, %v339_v25  ;;  %v2718_v43 = vor.u32 %v3826_v31, %v2715_v32 }
  0x45   :  { %v3145_v49 = vld [vmem:[#allocation2 + $0x420] sm:$0xf]  ;;  %v3546_v52 = vor.u32 %v4036_v45, %v3545_v44  ;;  %v3968_v53 = vld [vmem:[#allocation2 + $0x52c] sm:$0xf0]  ;;  %v3890_v36 = vld [vmem:[#allocation2 + $0x2c4] sm:$0xf]  ;;  %v2846_v45 = vor.u32 %v3858_v33, %v2843_v35 }
  0x46   :  { %v3273_v51 = vld [vmem:[#allocation2 + $0x520] sm:$0xf]  ;;  %v4000_v55 = vld [vmem:[#allocation2 + $0x62c] sm:$0xf0]  ;;  %v3146_v59 = vor.u32 %v3936_v50, %v3145_v49  ;;  %1706 = vmatpush.bf16.msrb.mxu1 %v3290_v47  ;;  %1719 = vmatpush.bf16.msrb.mxu2 %v3418_v48  ;;  %v2971_v37 = vld [vmem:[#allocation2 + $0x2d0] sm:$0xf0] }
  0x47   :  { %v3401_v54 = vld [vmem:[#allocation2 + $0x620] sm:$0xf]  ;;  %v4032_v57 = vld [vmem:[#allocation2 + $0x72c] sm:$0xf0]  ;;  %v3274_v63 = vor.u32 %v3968_v53, %v3273_v51  ;;  %1732 = vmatpush.bf16.msrb.mxu3 %v3546_v52  ;;  %v3922_v39 = vld [vmem:[#allocation2 + $0x3c4] sm:$0xf]  ;;  %v2974_v46 = vor.u32 %v3890_v36, %v2971_v37 }
  0x48   :  { %v3529_v56 = vld [vmem:[#allocation2 + $0x720] sm:$0xf]  ;;  %v3932_v60 = vld [vmem:[#allocation2 + $0x40c] sm:$0xf0]  ;;  %v3402_v0 = vor.u32 %v4000_v55, %v3401_v54  ;;  %1694 = vmatpush.bf16.msrb.mxu0 %v3146_v59  ;;  %v3099_v40 = vld [vmem:[#allocation2 + $0x3d0] sm:$0xf0] }
  0x49   :  { %v3129_v58 = vld [vmem:[#allocation2 + $0x400] sm:$0xf]  ;;  %v3964_v62 = vld [vmem:[#allocation2 + $0x50c] sm:$0xf0]  ;;  %v3530_v4 = vor.u32 %v4032_v57, %v3529_v56  ;;  %v3822_v47 = vld [vmem:[#allocation2 + $0xa4] sm:$0xf]  ;;  %v3102_v50 = vor.u32 %v3922_v39, %v3099_v40 }
  0x4a   :  { %v3257_v61 = vld [vmem:[#allocation2 + $0x500] sm:$0xf]  ;;  %v3996_v2 = vld [vmem:[#allocation2 + $0x60c] sm:$0xf0]  ;;  %v3130_v11 = vor.u32 %v3932_v60, %v3129_v58  ;;  %1707 = vmatpush.bf16.msrb.mxu1 %v3274_v63  ;;  %1720 = vmatpush.bf16.msrb.mxu2 %v3402_v0  ;;  %v2699_v48 = vld [vmem:[#allocation2 + $0xb0] sm:$0xf0] }
  0x4b   :  { %v3385_v1 = vld [vmem:[#allocation2 + $0x600] sm:$0xf]  ;;  %v4028_v6 = vld [vmem:[#allocation2 + $0x70c] sm:$0xf0]  ;;  %v3258_v16 = vor.u32 %v3964_v62, %v3257_v61  ;;  %1733 = vmatpush.bf16.msrb.mxu3 %v3530_v4  ;;  %v3854_v49 = vld [vmem:[#allocation2 + $0x1a4] sm:$0xf]  ;;  %v2702_v56 = vor.u32 %v3822_v47, %v2699_v48 }
  0x4c   :  { %v3513_v5 = vld [vmem:[#allocation2 + $0x700] sm:$0xf]  ;;  %v60_v7 = vld [vmem:[%s4480_s0 + $0x10] sm:$0xff]  ;;  %v3386_v17 = vor.u32 %v3996_v2, %v3385_v1  ;;  %1695 = vmatpush.bf16.msrb.mxu0 %v3130_v11  ;;  %v3886_v52 = vld [vmem:[#allocation2 + $0x2a4] sm:$0xf] }
  0x4d   :  { %v336_v24 = vunpack.c.l.b16 %v60_v7  ;;  %v3514_v26 = vor.u32 %v4028_v6, %v3513_v5  ;;  %v337_v28 = vunpack.c.h.b16 %v60_v7  ;;  %v2827_v51 = vld [vmem:[#allocation2 + $0x1b0] sm:$0xf0]  ;;  %v3918_v54 = vld [vmem:[#allocation2 + $0x3a4] sm:$0xf] }
  0x4e   :  { %1708 = vmatpush.bf16.msrb.mxu1 %v3258_v16  ;;  %1721 = vmatpush.bf16.msrb.mxu2 %v3386_v17  ;;  %v2955_v53 = vld [vmem:[#allocation2 + $0x2b0] sm:$0xf0]  ;;  %v2830_v57 = vor.u32 %v3854_v49, %v2827_v51  ;;  %v3818_v59 = vld [vmem:[#allocation2 + $0x84] sm:$0xf] }
  0x4f   :  { %v4250_v41 = vpack.c.b16 %v336_v24, %v336_v24  ;;  %1734 = vmatpush.bf16.msrb.mxu3 %v3514_v26  ;;  %v4254_v44 = vpack.c.b16 %v337_v28, %v337_v28  ;;  %v3083_v55 = vld [vmem:[#allocation2 + $0x3b0] sm:$0xf0]  ;;  %v2958_v58 = vor.u32 %v3886_v52, %v2955_v53  ;;  %v3850_v61 = vld [vmem:[#allocation2 + $0x184] sm:$0xf] }
  0x50   :  { %1740 = vmatpush.bf16.msra.mxu0 %v2734_v27  ;;  %v2683_v60 = vld [vmem:[#allocation2 + $0x90] sm:$0xf0]  ;;  %v3086_v62 = vor.u32 %v3918_v54, %v3083_v55  ;;  %v3882_v0 = vld [vmem:[#allocation2 + $0x284] sm:$0xf] }
  0x51   :  { %1722 = vmatmul.bf16.vlgmr.msrb.gmra.mxu2 %v4248_v38  ;;  %1696 = vmatmul.bf16.vlgmr.msrb.gmra.mxu0 %v4250_v41  ;;  %v2811_v63 = vld [vmem:[#allocation2 + $0x190] sm:$0xf0]  ;;  %v3914_v2 = vld [vmem:[#allocation2 + $0x384] sm:$0xf]  ;;  %v2686_v4 = vor.u32 %v3818_v59, %v2683_v60 }
  0x52   :  { %1753 = vmatpush.bf16.msra.mxu1 %v2862_v29  ;;  %1766 = vmatpush.bf16.msra.mxu2 %v2990_v30  ;;  %v2939_v1 = vld [vmem:[#allocation2 + $0x290] sm:$0xf0]  ;;  %v2814_v5 = vor.u32 %v3850_v61, %v2811_v63  ;;  %v3814_v7 = vld [vmem:[#allocation2 + $0x64] sm:$0xf] }
  0x53   :  { %1779 = vmatpush.bf16.msra.mxu3 %v3118_v34  ;;  %1709 = vmatmul.bf16.vlgmr.msrb.gmra.mxu1 %v4254_v44  ;;  %v3067_v3 = vld [vmem:[#allocation2 + $0x390] sm:$0xf0]  ;;  %v2942_v6 = vor.u32 %v3882_v0, %v2939_v1  ;;  %v3846_v9 = vld [vmem:[#allocation2 + $0x164] sm:$0xf] }
  0x54   :  { %1735 = vmatmul.bf16.vlgmr.msrb.gmra.mxu3 %v4252_v42  ;;  %1741 = vmatpush.bf16.msra.mxu0 %v2718_v43  ;;  %v2667_v8 = vld [vmem:[#allocation2 + $0x70] sm:$0xf0]  ;;  %v3070_v10 = vor.u32 %v3914_v2, %v3067_v3  ;;  %v3878_v12 = vld [vmem:[#allocation2 + $0x264] sm:$0xf] }
  0x55   :  { %v2795_v11 = vld [vmem:[#allocation2 + $0x170] sm:$0xf0]  ;;  %v3910_v14 = vld [vmem:[#allocation2 + $0x364] sm:$0xf]  ;;  %v2670_v16 = vor.u32 %v3814_v7, %v2667_v8 }
  0x56   :  { %1754 = vmatpush.bf16.msra.mxu1 %v2846_v45  ;;  %1767 = vmatpush.bf16.msra.mxu2 %v2974_v46  ;;  %v2923_v13 = vld [vmem:[#allocation2 + $0x270] sm:$0xf0]  ;;  %v2798_v17 = vor.u32 %v3846_v9, %v2795_v11  ;;  %v3810_v23 = vld [vmem:[#allocation2 + $0x44] sm:$0xf] }
  0x57   :  { %1780 = vmatpush.bf16.msra.mxu3 %v3102_v50  ;;  %v3051_v15 = vld [vmem:[#allocation2 + $0x370] sm:$0xf0]  ;;  %v2926_v21 = vor.u32 %v3878_v12, %v2923_v13  ;;  %v3842_v25 = vld [vmem:[#allocation2 + $0x144] sm:$0xf] }
  0x58   :  { %1742 = vmatpush.bf16.msra.mxu0 %v2702_v56  ;;  %v2651_v24 = vld [vmem:[#allocation2 + $0x50] sm:$0xf0]  ;;  %v3054_v26 = vor.u32 %v3910_v14, %v3051_v15  ;;  %v3874_v28 = vld [vmem:[#allocation2 + $0x244] sm:$0xf] }
  0x59   :  { %v2779_v27 = vld [vmem:[#allocation2 + $0x150] sm:$0xf0]  ;;  %v3906_v30 = vld [vmem:[#allocation2 + $0x344] sm:$0xf]  ;;  %v2654_v32 = vor.u32 %v3810_v23, %v2651_v24 }
  0x5a   :  { %1755 = vmatpush.bf16.msra.mxu1 %v2830_v57  ;;  %1768 = vmatpush.bf16.msra.mxu2 %v2958_v58  ;;  %v2907_v29 = vld [vmem:[#allocation2 + $0x250] sm:$0xf0]  ;;  %v2782_v33 = vor.u32 %v3842_v25, %v2779_v27  ;;  %v3806_v35 = vld [vmem:[#allocation2 + $0x24] sm:$0xf] }
  0x5b   :  { %1781 = vmatpush.bf16.msra.mxu3 %v3086_v62  ;;  %v3035_v31 = vld [vmem:[#allocation2 + $0x350] sm:$0xf0]  ;;  %v2910_v34 = vor.u32 %v3874_v28, %v2907_v29  ;;  %v3838_v37 = vld [vmem:[#allocation2 + $0x124] sm:$0xf] }
  0x5c   :  { %1743 = vmatpush.bf16.msra.mxu0 %v2686_v4  ;;  %v2635_v36 = vld [vmem:[#allocation2 + $0x30] sm:$0xf0]  ;;  %v3038_v39 = vor.u32 %v3906_v30, %v3035_v31  ;;  %v3870_v43 = vld [vmem:[#allocation2 + $0x224] sm:$0xf] }
  0x5d   :  { %v2763_v40 = vld [vmem:[#allocation2 + $0x130] sm:$0xf0]  ;;  %v3902_v46 = vld [vmem:[#allocation2 + $0x324] sm:$0xf]  ;;  %v2638_v48 = vor.u32 %v3806_v35, %v2635_v36 }
  0x5e   :  { %1756 = vmatpush.bf16.msra.mxu1 %v2814_v5  ;;  %1769 = vmatpush.bf16.msra.mxu2 %v2942_v6  ;;  %v2891_v45 = vld [vmem:[#allocation2 + $0x230] sm:$0xf0]  ;;  %v3802_v49 = vld [vmem:[#allocation2 + $0x4] sm:$0xf]  ;;  %v2766_v51 = vor.u32 %v3838_v37, %v2763_v40 }
  0x5f   :  { %1782 = vmatpush.bf16.msra.mxu3 %v3070_v10  ;;  %v3019_v47 = vld [vmem:[#allocation2 + $0x330] sm:$0xf0]  ;;  %v2894_v52 = vor.u32 %v3870_v43, %v2891_v45  ;;  %v3834_v53 = vld [vmem:[#allocation2 + $0x104] sm:$0xf] }
  0x60   :  { %1744 = vmatpush.bf16.msra.mxu0 %v2670_v16  ;;  %v2619_v50 = vld [vmem:[#allocation2 + $0x10] sm:$0xf0]  ;;  %v3866_v55 = vld [vmem:[#allocation2 + $0x204] sm:$0xf]  ;;  %v3022_v56 = vor.u32 %v3902_v46, %v3019_v47 }
  0x61   :  { %v2747_v54 = vld [vmem:[#allocation2 + $0x110] sm:$0xf0]  ;;  %v3898_v58 = vld [vmem:[#allocation2 + $0x304] sm:$0xf]  ;;  %v2622_v63 = vor.u32 %v3802_v49, %v2619_v50 }
  0x62   :  { %1757 = vmatpush.bf16.msra.mxu1 %v2798_v17  ;;  %1770 = vmatpush.bf16.msra.mxu2 %v2926_v21  ;;  %v2875_v57 = vld [vmem:[#allocation2 + $0x210] sm:$0xf0]  ;;  %v3958_v60 = vld [vmem:[#allocation2 + $0x4e4] sm:$0xf]  ;;  %v2750_v3 = vor.u32 %v3834_v53, %v2747_v54 }
  0x63   :  { %1783 = vmatpush.bf16.msra.mxu3 %v3054_v26  ;;  %v3003_v59 = vld [vmem:[#allocation2 + $0x310] sm:$0xf0]  ;;  %v3990_v62 = vld [vmem:[#allocation2 + $0x5e4] sm:$0xf]  ;;  %v2878_v4 = vor.u32 %v3866_v55, %v2875_v57 }
  0x64   :  { %1745 = vmatpush.bf16.msra.mxu0 %v2654_v32  ;;  %v3243_v61 = vld [vmem:[#allocation2 + $0x4f0] sm:$0xf0]  ;;  %v4022_v1 = vld [vmem:[#allocation2 + $0x6e4] sm:$0xf]  ;;  %v3006_v7 = vor.u32 %v3898_v58, %v3003_v59 }
  0x65   :  { %v3371_v0 = vld [vmem:[#allocation2 + $0x5f0] sm:$0xf0]  ;;  %v4054_v5 = vld [vmem:[#allocation2 + $0x7e4] sm:$0xf]  ;;  %v3246_v8 = vor.u32 %v3958_v60, %v3243_v61 }
  0x66   :  { %1758 = vmatpush.bf16.msra.mxu1 %v2782_v33  ;;  %1771 = vmatpush.bf16.msra.mxu2 %v2910_v34  ;;  %v3499_v2 = vld [vmem:[#allocation2 + $0x6f0] sm:$0xf0]  ;;  %v3374_v9 = vor.u32 %v3990_v62, %v3371_v0  ;;  %v3954_v11 = vld [vmem:[#allocation2 + $0x4c4] sm:$0xf] }
  0x67   :  { %1784 = vmatpush.bf16.msra.mxu3 %v3038_v39  ;;  %v3627_v6 = vld [vmem:[#allocation2 + $0x7f0] sm:$0xf0]  ;;  %v3502_v10 = vor.u32 %v4022_v1, %v3499_v2  ;;  %v3986_v13 = vld [vmem:[#allocation2 + $0x5c4] sm:$0xf] }
  0x68   :  { %1746 = vmatpush.bf16.msra.mxu0 %v2638_v48  ;;  %v3227_v12 = vld [vmem:[#allocation2 + $0x4d0] sm:$0xf0]  ;;  %v3630_v14 = vor.u32 %v4054_v5, %v3627_v6  ;;  %v4018_v16 = vld [vmem:[#allocation2 + $0x6c4] sm:$0xf] }
  0x69   :  { %v3355_v15 = vld [vmem:[#allocation2 + $0x5d0] sm:$0xf0]  ;;  %v4050_v21 = vld [vmem:[#allocation2 + $0x7c4] sm:$0xf]  ;;  %v3230_v24 = vor.u32 %v3954_v11, %v3227_v12 }
  0x6a   :  { %1759 = vmatpush.bf16.msra.mxu1 %v2766_v51  ;;  %1772 = vmatpush.bf16.msra.mxu2 %v2894_v52  ;;  %v3483_v17 = vld [vmem:[#allocation2 + $0x6d0] sm:$0xf0]  ;;  %v3358_v25 = vor.u32 %v3986_v13, %v3355_v15  ;;  %v3950_v27 = vld [vmem:[#allocation2 + $0x4a4] sm:$0xf] }
  0x6b   :  { %1785 = vmatpush.bf16.msra.mxu3 %v3022_v56  ;;  %v3611_v23 = vld [vmem:[#allocation2 + $0x7d0] sm:$0xf0]  ;;  %v3486_v26 = vor.u32 %v4018_v16, %v3483_v17  ;;  %v3982_v29 = vld [vmem:[#allocation2 + $0x5a4] sm:$0xf] }
  0x6c   :  { %1747 = vmatpush.bf16.msra.mxu0 %v2622_v63  ;;  %v3211_v28 = vld [vmem:[#allocation2 + $0x4b0] sm:$0xf0]  ;;  %v3614_v30 = vor.u32 %v4050_v21, %v3611_v23  ;;  %v4014_v32 = vld [vmem:[#allocation2 + $0x6a4] sm:$0xf] }
  0x6d   :  { %v3339_v31 = vld [vmem:[#allocation2 + $0x5b0] sm:$0xf0]  ;;  %v4046_v34 = vld [vmem:[#allocation2 + $0x7a4] sm:$0xf]  ;;  %v3214_v36 = vor.u32 %v3950_v27, %v3211_v28 }
  0x6e   :  { %1760 = vmatpush.bf16.msra.mxu1 %v2750_v3  ;;  %1773 = vmatpush.bf16.msra.mxu2 %v2878_v4  ;;  %v3467_v33 = vld [vmem:[#allocation2 + $0x6b0] sm:$0xf0]  ;;  %v3342_v37 = vor.u32 %v3982_v29, %v3339_v31  ;;  %v3946_v40 = vld [vmem:[#allocation2 + $0x484] sm:$0xf] }
  0x6f   :  { %1786 = vmatpush.bf16.msra.mxu3 %v3006_v7  ;;  %v3595_v35 = vld [vmem:[#allocation2 + $0x7b0] sm:$0xf0]  ;;  %1748 = vmatmul.bf16.vlgmr.msra.gmra.mxu0 %v4232_v19  ;;  %v3470_v39 = vor.u32 %v4014_v32, %v3467_v33  ;;  %v3978_v45 = vld [vmem:[#allocation2 + $0x584] sm:$0xf] }
  0x70   :  { %1792 = vmatpush.bf16.msrb.mxu0 %v3246_v8  ;;  %v3195_v43 = vld [vmem:[#allocation2 + $0x490] sm:$0xf0]  ;;  %v3598_v46 = vor.u32 %v4046_v34, %v3595_v35  ;;  %v4010_v48 = vld [vmem:[#allocation2 + $0x684] sm:$0xf] }
  0x71   :  { %1774 = vmatmul.bf16.vlgmr.msra.gmra.mxu2 %v4230_v18  ;;  %1761 = vmatmul.bf16.vlgmr.msra.gmra.mxu1 %v4236_v22  ;;  %v3323_v47 = vld [vmem:[#allocation2 + $0x590] sm:$0xf0]  ;;  %v4042_v50 = vld [vmem:[#allocation2 + $0x784] sm:$0xf]  ;;  %v3198_v52 = vor.u32 %v3946_v40, %v3195_v43  ;;  %v2737_v43 = vld [vmem:[#allocation2 + $0xe8] sm:$0xf] }
  0x72   :  { %1805 = vmatpush.bf16.msrb.mxu1 %v3374_v9  ;;  %1818 = vmatpush.bf16.msrb.mxu2 %v3502_v10  ;;  %v3451_v49 = vld [vmem:[#allocation2 + $0x690] sm:$0xf0]  ;;  %v3326_v53 = vor.u32 %v3978_v45, %v3323_v47  ;;  %v3942_v55 = vld [vmem:[#allocation2 + $0x464] sm:$0xf]  ;;  %v3833_v45 = vld [vmem:[#allocation2 + $0xf4] sm:$0xf0] }
  0x73   :  { %1831 = vmatpush.bf16.msrb.mxu3 %v3630_v14  ;;  %v3579_v51 = vld [vmem:[#allocation2 + $0x790] sm:$0xf0]  ;;  %v3454_v54 = vor.u32 %v4010_v48, %v3451_v49  ;;  %v3974_v57 = vld [vmem:[#allocation2 + $0x564] sm:$0xf]  ;;  %v3865_v48 = vld [vmem:[#allocation2 + $0x1f4] sm:$0xf0] }
  0x74   :  { %1787 = vmatmul.bf16.vlgmr.msra.gmra.mxu3 %v4234_v20  ;;  %1793 = vmatpush.bf16.msrb.mxu0 %v3230_v24  ;;  %v3179_v56 = vld [vmem:[#allocation2 + $0x470] sm:$0xf0]  ;;  %v3582_v58 = vor.u32 %v4042_v50, %v3579_v51  ;;  %v4006_v60 = vld [vmem:[#allocation2 + $0x664] sm:$0xf]  ;;  %v2993_v49 = vld [vmem:[#allocation2 + $0x2e8] sm:$0xf] }
  0x75   :  { %v3307_v59 = vld [vmem:[#allocation2 + $0x570] sm:$0xf0]  ;;  %v4038_v62 = vld [vmem:[#allocation2 + $0x764] sm:$0xf]  ;;  %v3182_v0 = vor.u32 %v3942_v55, %v3179_v56  ;;  %v3897_v50 = vld [vmem:[#allocation2 + $0x2f4] sm:$0xf0]  ;;  %v2738_v56 = vor.u32 %v3833_v45, %v2737_v43 }
  0x76   :  { %1806 = vmatpush.bf16.msrb.mxu1 %v3358_v25  ;;  %1819 = vmatpush.bf16.msrb.mxu2 %v3486_v26  ;;  %v3435_v61 = vld [vmem:[#allocation2 + $0x670] sm:$0xf0]  ;;  %v3310_v1 = vor.u32 %v3974_v57, %v3307_v59  ;;  %v3938_v3 = vld [vmem:[#allocation2 + $0x444] sm:$0xf]  ;;  %v2721_v59 = vld [vmem:[#allocation2 + $0xc8] sm:$0xf] }
  0x77   :  { %1832 = vmatpush.bf16.msrb.mxu3 %v3614_v30  ;;  %v3563_v63 = vld [vmem:[#allocation2 + $0x770] sm:$0xf0]  ;;  %v3438_v2 = vor.u32 %v4006_v60, %v3435_v61  ;;  %v3970_v5 = vld [vmem:[#allocation2 + $0x544] sm:$0xf]  ;;  %v3829_v60 = vld [vmem:[#allocation2 + $0xd4] sm:$0xf0] }
  0x78   :  { %1794 = vmatpush.bf16.msrb.mxu0 %v3214_v36  ;;  %v3163_v4 = vld [vmem:[#allocation2 + $0x450] sm:$0xf0]  ;;  %v3566_v6 = vor.u32 %v4038_v62, %v3563_v63  ;;  %v4002_v8 = vld [vmem:[#allocation2 + $0x644] sm:$0xf]  ;;  %v2849_v61 = vld [vmem:[#allocation2 + $0x1c8] sm:$0xf] }
  0x79   :  { %v3291_v7 = vld [vmem:[#allocation2 + $0x550] sm:$0xf0]  ;;  %v4034_v10 = vld [vmem:[#allocation2 + $0x744] sm:$0xf]  ;;  %v3166_v12 = vor.u32 %v3938_v3, %v3163_v4  ;;  %v3861_v63 = vld [vmem:[#allocation2 + $0x1d4] sm:$0xf0]  ;;  %v2722_v4 = vor.u32 %v3829_v60, %v2721_v59 }
  0x7a   :  { %1807 = vmatpush.bf16.msrb.mxu1 %v3342_v37  ;;  %1820 = vmatpush.bf16.msrb.mxu2 %v3470_v39  ;;  %v3419_v9 = vld [vmem:[#allocation2 + $0x650] sm:$0xf0]  ;;  %v3294_v13 = vor.u32 %v3970_v5, %v3291_v7  ;;  %v3934_v15 = vld [vmem:[#allocation2 + $0x424] sm:$0xf]  ;;  %v3925_v3 = vld [vmem:[#allocation2 + $0x3d4] sm:$0xf0]  ;;  %v2850_v5 = vor.u32 %v3861_v63, %v2849_v61 }
  0x7b   :  { %1833 = vmatpush.bf16.msrb.mxu3 %v3598_v46  ;;  %v3547_v11 = vld [vmem:[#allocation2 + $0x750] sm:$0xf0]  ;;  %v3422_v14 = vor.u32 %v4002_v8, %v3419_v9  ;;  %v3966_v17 = vld [vmem:[#allocation2 + $0x524] sm:$0xf]  ;;  %v2865_v46 = vld [vmem:[#allocation2 + $0x1e8] sm:$0xf] }
  0x7c   :  { %1795 = vmatpush.bf16.msrb.mxu0 %v3198_v52  ;;  %v3147_v16 = vld [vmem:[#allocation2 + $0x430] sm:$0xf0]  ;;  %v3550_v21 = vor.u32 %v4034_v10, %v3547_v11  ;;  %v3998_v24 = vld [vmem:[#allocation2 + $0x624] sm:$0xf]  ;;  %v2866_v57 = vor.u32 %v3865_v48, %v2865_v46  ;;  %v2705_v7 = vld [vmem:[#allocation2 + $0xa8] sm:$0xf] }
  0x7d   :  { %v3275_v23 = vld [vmem:[#allocation2 + $0x530] sm:$0xf0]  ;;  %v4030_v26 = vld [vmem:[#allocation2 + $0x724] sm:$0xf]  ;;  %v3150_v28 = vor.u32 %v3934_v15, %v3147_v16  ;;  %v3825_v8 = vld [vmem:[#allocation2 + $0xb4] sm:$0xf0] }
  0x7e   :  { %1808 = vmatpush.bf16.msrb.mxu1 %v3326_v53  ;;  %1821 = vmatpush.bf16.msrb.mxu2 %v3454_v54  ;;  %v3403_v25 = vld [vmem:[#allocation2 + $0x630] sm:$0xf0]  ;;  %v3930_v29 = vld [vmem:[#allocation2 + $0x404] sm:$0xf]  ;;  %v3278_v31 = vor.u32 %v3966_v17, %v3275_v23  ;;  %v3121_v53 = vld [vmem:[#allocation2 + $0x3e8] sm:$0xf]  ;;  %v2706_v16 = vor.u32 %v3825_v8, %v2705_v7 }
  0x7f   :  { %1834 = vmatpush.bf16.msrb.mxu3 %v3582_v58  ;;  %v3531_v27 = vld [vmem:[#allocation2 + $0x730] sm:$0xf0]  ;;  %v3406_v32 = vor.u32 %v3998_v24, %v3403_v25  ;;  %v3962_v33 = vld [vmem:[#allocation2 + $0x504] sm:$0xf]  ;;  %v3929_v54 = vld [vmem:[#allocation2 + $0x3f4] sm:$0xf0]  ;;  %v2994_v58 = vor.u32 %v3897_v50, %v2993_v49 }
  0x80   :  { %1796 = vmatpush.bf16.msrb.mxu0 %v3182_v0  ;;  %v3131_v30 = vld [vmem:[#allocation2 + $0x410] sm:$0xf0]  ;;  %v3994_v35 = vld [vmem:[#allocation2 + $0x604] sm:$0xf]  ;;  %v3534_v36 = vor.u32 %v4030_v26, %v3531_v27  ;;  %v3122_v62 = vor.u32 %v3929_v54, %v3121_v53  ;;  %v2977_v0 = vld [vmem:[#allocation2 + $0x2c8] sm:$0xf] }
  0x81   :  { %v3259_v34 = vld [vmem:[#allocation2 + $0x510] sm:$0xf0]  ;;  %v4026_v39 = vld [vmem:[#allocation2 + $0x704] sm:$0xf]  ;;  %v3134_v47 = vor.u32 %v3930_v29, %v3131_v30  ;;  %v2833_v9 = vld [vmem:[#allocation2 + $0x1a8] sm:$0xf] }
  0x82   :  { %1809 = vmatpush.bf16.msrb.mxu1 %v3310_v1  ;;  %1822 = vmatpush.bf16.msrb.mxu2 %v3438_v2  ;;  %v3387_v37 = vld [vmem:[#allocation2 + $0x610] sm:$0xf0]  ;;  %v3262_v51 = vor.u32 %v3962_v33, %v3259_v34  ;;  %v3893_v1 = vld [vmem:[#allocation2 + $0x2d4] sm:$0xf0]  ;;  %v3105_v2 = vld [vmem:[#allocation2 + $0x3c8] sm:$0xf] }
  0x83   :  { %1835 = vmatpush.bf16.msrb.mxu3 %v3566_v6  ;;  %v3515_v40 = vld [vmem:[#allocation2 + $0x710] sm:$0xf0]  ;;  %v3390_v52 = vor.u32 %v3994_v35, %v3387_v37  ;;  %v2978_v6 = vor.u32 %v3893_v1, %v2977_v0  ;;  %v3106_v10 = vor.u32 %v3925_v3, %v3105_v2  ;;  %v3857_v11 = vld [vmem:[#allocation2 + $0x1b4] sm:$0xf0]  ;;  %v2689_v23 = vld [vmem:[#allocation2 + $0x88] sm:$0xf] }
  0x84   :  { %1797 = vmatpush.bf16.msrb.mxu0 %v3166_v12  ;;  %v3518_v55 = vor.u32 %v4026_v39, %v3515_v40  ;;  %v2961_v12 = vld [vmem:[#allocation2 + $0x2a8] sm:$0xf]  ;;  %v3921_v15 = vld [vmem:[#allocation2 + $0x3b4] sm:$0xf0]  ;;  %v2834_v17 = vor.u32 %v3857_v11, %v2833_v9 }
  0x85   :  { %v3821_v24 = vld [vmem:[#allocation2 + $0x94] sm:$0xf0]  ;;  %v2817_v25 = vld [vmem:[#allocation2 + $0x188] sm:$0xf] }
  0x86   :  { %1810 = vmatpush.bf16.msrb.mxu1 %v3294_v13  ;;  %1823 = vmatpush.bf16.msrb.mxu2 %v3422_v14  ;;  %v3889_v13 = vld [vmem:[#allocation2 + $0x2b4] sm:$0xf0]  ;;  %v3089_v14 = vld [vmem:[#allocation2 + $0x3a8] sm:$0xf] }
  0x87   :  { %1836 = vmatpush.bf16.msrb.mxu3 %v3550_v21  ;;  %v2962_v21 = vor.u32 %v3889_v13, %v2961_v12  ;;  %v3090_v26 = vor.u32 %v3921_v15, %v3089_v14  ;;  %v3853_v27 = vld [vmem:[#allocation2 + $0x194] sm:$0xf0]  ;;  %v3073_v30 = vld [vmem:[#allocation2 + $0x388] sm:$0xf] }
  0x88   :  { %1798 = vmatpush.bf16.msrb.mxu0 %v3150_v28  ;;  %v2945_v28 = vld [vmem:[#allocation2 + $0x288] sm:$0xf]  ;;  %v3885_v29 = vld [vmem:[#allocation2 + $0x294] sm:$0xf0]  ;;  %v2818_v33 = vor.u32 %v3853_v27, %v2817_v25 }
  0x89   :  { %v2946_v34 = vor.u32 %v3885_v29, %v2945_v28  ;;  %v2673_v35 = vld [vmem:[#allocation2 + $0x68] sm:$0xf]  ;;  %v3849_v40 = vld [vmem:[#allocation2 + $0x174] sm:$0xf0] }
  0x8a   :  { %1811 = vmatpush.bf16.msrb.mxu1 %v3278_v31  ;;  %1824 = vmatpush.bf16.msrb.mxu2 %v3406_v32  ;;  %v3917_v31 = vld [vmem:[#allocation2 + $0x394] sm:$0xf0]  ;;  %v2690_v32 = vor.u32 %v3821_v24, %v2689_v23  ;;  %v2801_v37 = vld [vmem:[#allocation2 + $0x168] sm:$0xf] }
  0x8b   :  { %1837 = vmatpush.bf16.msrb.mxu3 %v3534_v36  ;;  %v3817_v36 = vld [vmem:[#allocation2 + $0x74] sm:$0xf0]  ;;  %v3074_v39 = vor.u32 %v3917_v31, %v3073_v30  ;;  %v2929_v43 = vld [vmem:[#allocation2 + $0x268] sm:$0xf]  ;;  %v2802_v49 = vor.u32 %v3849_v40, %v2801_v37 }
  0x8c   :  { %1799 = vmatpush.bf16.msrb.mxu0 %v3134_v47  ;;  %v3881_v45 = vld [vmem:[#allocation2 + $0x274] sm:$0xf0]  ;;  %v3057_v46 = vld [vmem:[#allocation2 + $0x368] sm:$0xf]  ;;  %v2674_v48 = vor.u32 %v3817_v36, %v2673_v35 }
  0x8d   :  { %v3913_v47 = vld [vmem:[#allocation2 + $0x374] sm:$0xf0]  ;;  %v2930_v50 = vor.u32 %v3881_v45, %v2929_v43  ;;  %v2785_v53 = vld [vmem:[#allocation2 + $0x148] sm:$0xf] }
  0x8e   :  { %1812 = vmatpush.bf16.msrb.mxu1 %v3262_v51  ;;  %1825 = vmatpush.bf16.msrb.mxu2 %v3390_v52  ;;  %v2657_v51 = vld [vmem:[#allocation2 + $0x48] sm:$0xf]  ;;  %v3813_v52 = vld [vmem:[#allocation2 + $0x54] sm:$0xf0]  ;;  %v3058_v54 = vor.u32 %v3913_v47, %v3057_v46 }
  0x8f   :  { %1838 = vmatpush.bf16.msrb.mxu3 %v3518_v55  ;;  %1800 = vmatmul.bf16.vlgmr.msrb.gmra.mxu0 %v4250_v41  ;;  %v3845_v55 = vld [vmem:[#allocation2 + $0x154] sm:$0xf0]  ;;  %v2658_v60 = vor.u32 %v3813_v52, %v2657_v51  ;;  %v2641_v63 = vld [vmem:[#allocation2 + $0x28] sm:$0xf] }
  0x90   :  { %1844 = vmatpush.bf16.msra.mxu0 %v2738_v56  ;;  %v2913_v56 = vld [vmem:[#allocation2 + $0x248] sm:$0xf]  ;;  %v3909_v59 = vld [vmem:[#allocation2 + $0x354] sm:$0xf0]  ;;  %v2786_v61 = vor.u32 %v3845_v55, %v2785_v53 }
  0x91   :  { %1826 = vmatmul.bf16.vlgmr.msrb.gmra.mxu2 %v4248_v38  ;;  %1813 = vmatmul.bf16.vlgmr.msrb.gmra.mxu1 %v4254_v44  ;;  %v3809_v0 = vld [vmem:[#allocation2 + $0x34] sm:$0xf0]  ;;  %v2769_v1 = vld [vmem:[#allocation2 + $0x128] sm:$0xf] }
  0x92   :  { %1857 = vmatpush.bf16.msra.mxu1 %v2866_v57  ;;  %1870 = vmatpush.bf16.msra.mxu2 %v2994_v58  ;;  %v3877_v57 = vld [vmem:[#allocation2 + $0x254] sm:$0xf0]  ;;  %v3041_v58 = vld [vmem:[#allocation2 + $0x348] sm:$0xf]  ;;  %v2642_v8 = vor.u32 %v3809_v0, %v2641_v63 }
  0x93   :  { %1883 = vmatpush.bf16.msra.mxu3 %v3122_v62  ;;  %v2914_v62 = vor.u32 %v3877_v57, %v2913_v56  ;;  %v3042_v2 = vor.u32 %v3909_v59, %v3041_v58  ;;  %v3841_v3 = vld [vmem:[#allocation2 + $0x134] sm:$0xf0]  ;;  %v2625_v9 = vld [vmem:[#allocation2 + $0x8] sm:$0xf] }
  0x94   :  { %1839 = vmatmul.bf16.vlgmr.msrb.gmra.mxu3 %v4252_v42  ;;  %1845 = vmatpush.bf16.msra.mxu0 %v2722_v4  ;;  %v2897_v4 = vld [vmem:[#allocation2 + $0x228] sm:$0xf]  ;;  %v3905_v7 = vld [vmem:[#allocation2 + $0x334] sm:$0xf0]  ;;  %v2770_v11 = vor.u32 %v3841_v3, %v2769_v1 }
  0x95   :  { %v2753_v13 = vld [vmem:[#allocation2 + $0x108] sm:$0xf]  ;;  %v3837_v14 = vld [vmem:[#allocation2 + $0x114] sm:$0xf0] }
  0x96   :  { %1858 = vmatpush.bf16.msra.mxu1 %v2850_v5  ;;  %1871 = vmatpush.bf16.msra.mxu2 %v2978_v6  ;;  %v3873_v5 = vld [vmem:[#allocation2 + $0x234] sm:$0xf0]  ;;  %v3025_v6 = vld [vmem:[#allocation2 + $0x328] sm:$0xf]  ;;  %v2754_v31 = vor.u32 %v3837_v14, %v2753_v13 }
  0x97   :  { %1884 = vmatpush.bf16.msra.mxu3 %v3106_v10  ;;  %v3805_v10 = vld [vmem:[#allocation2 + $0x14] sm:$0xf0]  ;;  %v2898_v12 = vor.u32 %v3873_v5, %v2897_v4  ;;  %v2881_v15 = vld [vmem:[#allocation2 + $0x208] sm:$0xf] }
  0x98   :  { %1846 = vmatpush.bf16.msra.mxu0 %v2706_v16  ;;  %v3026_v16 = vor.u32 %v3905_v7, %v3025_v6  ;;  %v3901_v23 = vld [vmem:[#allocation2 + $0x314] sm:$0xf0]  ;;  %v3249_v24 = vld [vmem:[#allocation2 + $0x4e8] sm:$0xf]  ;;  %v2626_v27 = vor.u32 %v3805_v10, %v2625_v9 }
  0x99   :  { %v3961_v25 = vld [vmem:[#allocation2 + $0x4f4] sm:$0xf0]  ;;  %v3505_v29 = vld [vmem:[#allocation2 + $0x6e8] sm:$0xf] }
  0x9a   :  { %1859 = vmatpush.bf16.msra.mxu1 %v2834_v17  ;;  %1872 = vmatpush.bf16.msra.mxu2 %v2962_v21  ;;  %v3869_v17 = vld [vmem:[#allocation2 + $0x214] sm:$0xf0]  ;;  %v3009_v21 = vld [vmem:[#allocation2 + $0x308] sm:$0xf]  ;;  %v3250_v36 = vor.u32 %v3961_v25, %v3249_v24 }
  0x9b   :  { %1885 = vmatpush.bf16.msra.mxu3 %v3090_v26  ;;  %v3377_v26 = vld [vmem:[#allocation2 + $0x5e8] sm:$0xf]  ;;  %v3993_v28 = vld [vmem:[#allocation2 + $0x5f4] sm:$0xf0]  ;;  %v3010_v35 = vor.u32 %v3901_v23, %v3009_v21 }
  0x9c   :  { %1847 = vmatpush.bf16.msra.mxu0 %v2690_v32  ;;  %v4025_v30 = vld [vmem:[#allocation2 + $0x6f4] sm:$0xf0]  ;;  %v2882_v32 = vor.u32 %v3869_v17, %v2881_v15  ;;  %v3378_v37 = vor.u32 %v3993_v28, %v3377_v26  ;;  %v3233_v40 = vld [vmem:[#allocation2 + $0x4c8] sm:$0xf]  ;;  %v4275_v26 = vld [vmem:[%s4482_s2] sm:$0xf] }
  0x9d   :  { %v3957_v43 = vld [vmem:[#allocation2 + $0x4d4] sm:$0xf0]  ;;  %v3361_v45 = vld [vmem:[#allocation2 + $0x5c8] sm:$0xf] }
  0x9e   :  { %1860 = vmatpush.bf16.msra.mxu1 %v2818_v33  ;;  %1873 = vmatpush.bf16.msra.mxu2 %v2946_v34  ;;  %v3633_v33 = vld [vmem:[#allocation2 + $0x7e8] sm:$0xf]  ;;  %v4057_v34 = vld [vmem:[#allocation2 + $0x7f4] sm:$0xf0]  ;;  %v3234_v52 = vor.u32 %v3957_v43, %v3233_v40 }
  0x9f   :  { %1886 = vmatpush.bf16.msra.mxu3 %v3074_v39  ;;  %v3506_v39 = vor.u32 %v4025_v30, %v3505_v29  ;;  %v3634_v46 = vor.u32 %v4057_v34, %v3633_v33  ;;  %v3989_v47 = vld [vmem:[#allocation2 + $0x5d4] sm:$0xf0]  ;;  %v3217_v55 = vld [vmem:[#allocation2 + $0x4a8] sm:$0xf] }
  0xa0   :  { %1848 = vmatpush.bf16.msra.mxu0 %v2674_v48  ;;  %v3489_v48 = vld [vmem:[#allocation2 + $0x6c8] sm:$0xf]  ;;  %v4053_v51 = vld [vmem:[#allocation2 + $0x7d4] sm:$0xf0]  ;;  %v3362_v53 = vor.u32 %v3989_v47, %v3361_v45 }
  0xa1   :  { %v3953_v56 = vld [vmem:[#allocation2 + $0x4b4] sm:$0xf0]  ;;  %v3345_v57 = vld [vmem:[#allocation2 + $0x5a8] sm:$0xf] }
  0xa2   :  { %1861 = vmatpush.bf16.msra.mxu1 %v2802_v49  ;;  %1874 = vmatpush.bf16.msra.mxu2 %v2930_v50  ;;  %v4021_v49 = vld [vmem:[#allocation2 + $0x6d4] sm:$0xf0]  ;;  %v3617_v50 = vld [vmem:[#allocation2 + $0x7c8] sm:$0xf]  ;;  %v3218_v0 = vor.u32 %v3953_v56, %v3217_v55 }
  0xa3   :  { %1887 = vmatpush.bf16.msra.mxu3 %v3058_v54  ;;  %v3490_v54 = vor.u32 %v4021_v49, %v3489_v48  ;;  %v3618_v58 = vor.u32 %v4053_v51, %v3617_v50  ;;  %v3985_v59 = vld [vmem:[#allocation2 + $0x5b4] sm:$0xf0]  ;;  %v3201_v3 = vld [vmem:[#allocation2 + $0x488] sm:$0xf] }
  0xa4   :  { %1849 = vmatpush.bf16.msra.mxu0 %v2658_v60  ;;  %v3473_v60 = vld [vmem:[#allocation2 + $0x6a8] sm:$0xf]  ;;  %v4049_v63 = vld [vmem:[#allocation2 + $0x7b4] sm:$0xf0]  ;;  %v3346_v1 = vor.u32 %v3985_v59, %v3345_v57 }
  0xa5   :  { %v3949_v4 = vld [vmem:[#allocation2 + $0x494] sm:$0xf0]  ;;  %v3329_v5 = vld [vmem:[#allocation2 + $0x588] sm:$0xf] }
  0xa6   :  { %1862 = vmatpush.bf16.msra.mxu1 %v2786_v61  ;;  %1875 = vmatpush.bf16.msra.mxu2 %v2914_v62  ;;  %v4017_v61 = vld [vmem:[#allocation2 + $0x6b4] sm:$0xf0]  ;;  %v3601_v62 = vld [vmem:[#allocation2 + $0x7a8] sm:$0xf] }
  0xa7   :  { %1888 = vmatpush.bf16.msra.mxu3 %v3042_v2  ;;  %v3474_v2 = vor.u32 %v4017_v61, %v3473_v60  ;;  %v3602_v6 = vor.u32 %v4049_v63, %v3601_v62  ;;  %v3981_v7 = vld [vmem:[#allocation2 + $0x594] sm:$0xf0]  ;;  %v3585_v10 = vld [vmem:[#allocation2 + $0x788] sm:$0xf] }
  0xa8   :  { %1850 = vmatpush.bf16.msra.mxu0 %v2642_v8  ;;  %v3457_v8 = vld [vmem:[#allocation2 + $0x688] sm:$0xf]  ;;  %v4013_v9 = vld [vmem:[#allocation2 + $0x694] sm:$0xf0]  ;;  %v3330_v14 = vor.u32 %v3981_v7, %v3329_v5 }
  0xa9   :  { %v3185_v13 = vld [vmem:[#allocation2 + $0x468] sm:$0xf]  ;;  %v3458_v15 = vor.u32 %v4013_v9, %v3457_v8  ;;  %v3977_v21 = vld [vmem:[#allocation2 + $0x574] sm:$0xf0] }
  0xaa   :  { %1863 = vmatpush.bf16.msra.mxu1 %v2770_v11  ;;  %1876 = vmatpush.bf16.msra.mxu2 %v2898_v12  ;;  %v4045_v11 = vld [vmem:[#allocation2 + $0x794] sm:$0xf0]  ;;  %v3202_v12 = vor.u32 %v3949_v4, %v3201_v3  ;;  %v3313_v17 = vld [vmem:[#allocation2 + $0x568] sm:$0xf] }
  0xab   :  { %1889 = vmatpush.bf16.msra.mxu3 %v3026_v16  ;;  %v3945_v16 = vld [vmem:[#allocation2 + $0x474] sm:$0xf0]  ;;  %v3586_v23 = vor.u32 %v4045_v11, %v3585_v10  ;;  %v3441_v24 = vld [vmem:[#allocation2 + $0x668] sm:$0xf] }
  0xac   :  { %1851 = vmatpush.bf16.msra.mxu0 %v2626_v27  ;;  %v4009_v25 = vld [vmem:[#allocation2 + $0x674] sm:$0xf0]  ;;  %v3569_v27 = vld [vmem:[#allocation2 + $0x768] sm:$0xf]  ;;  %v3186_v29 = vor.u32 %v3945_v16, %v3185_v13  ;;  %v3831_v13 = vld [vmem:[#allocation2 + $0xec] sm:$0xf] }
  0xad   :  { %v4041_v28 = vld [vmem:[#allocation2 + $0x774] sm:$0xf0]  ;;  %v3169_v30 = vld [vmem:[#allocation2 + $0x448] sm:$0xf] }
  0xae   :  { %1864 = vmatpush.bf16.msra.mxu1 %v2754_v31  ;;  %1877 = vmatpush.bf16.msra.mxu2 %v2882_v32  ;;  %v3314_v31 = vor.u32 %v3977_v21, %v3313_v17  ;;  %v3442_v32 = vor.u32 %v4009_v25, %v3441_v24  ;;  %v3941_v33 = vld [vmem:[#allocation2 + $0x454] sm:$0xf0]  ;;  %v3297_v34 = vld [vmem:[#allocation2 + $0x548] sm:$0xf]  ;;  %v2867_v17 = vld [vmem:[#allocation2 + $0x1f8] sm:$0xf0] }
  0xaf   :  { %1890 = vmatpush.bf16.msra.mxu3 %v3010_v35  ;;  %1852 = vmatmul.bf16.vlgmr.msra.gmra.mxu0 %v4232_v19  ;;  %v320_v35 = vperm.slane %v4275_v26, 0  ;;  %v4005_v40 = vld [vmem:[#allocation2 + $0x654] sm:$0xf0]  ;;  %v3553_v43 = vld [vmem:[#allocation2 + $0x748] sm:$0xf] }
  0xb0   :  { %1896 = vmatpush.bf16.msrb.mxu0 %v3250_v36  ;;  %v3570_v36 = vor.u32 %v4041_v28, %v3569_v27  ;;  %v4037_v45 = vld [vmem:[#allocation2 + $0x754] sm:$0xf0]  ;;  %v3153_v50 = vld [vmem:[#allocation2 + $0x428] sm:$0xf]  ;;  %v3895_v21 = vld [vmem:[#allocation2 + $0x2ec] sm:$0xf] }
  0xb1   :  { %1878 = vmatmul.bf16.vlgmr.msra.gmra.mxu2 %v4230_v18  ;;  %1865 = vmatmul.bf16.vlgmr.msra.gmra.mxu1 %v4236_v22  ;;  %v3937_v51 = vld [vmem:[#allocation2 + $0x434] sm:$0xf0]  ;;  %v3554_v55 = vor.u32 %v4037_v45, %v3553_v43  ;;  %v3409_v57 = vld [vmem:[#allocation2 + $0x628] sm:$0xf]  ;;  %v2851_v43 = vld [vmem:[#allocation2 + $0x1d8] sm:$0xf0] }
  0xb2   :  { %1909 = vmatpush.bf16.msrb.mxu1 %v3378_v37  ;;  %1922 = vmatpush.bf16.msrb.mxu2 %v3506_v39  ;;  %v3973_v37 = vld [vmem:[#allocation2 + $0x554] sm:$0xf0]  ;;  %v3425_v39 = vld [vmem:[#allocation2 + $0x648] sm:$0xf]  ;;  %v3154_v62 = vor.u32 %v3937_v51, %v3153_v50  ;;  %v3891_v45 = vld [vmem:[#allocation2 + $0x2cc] sm:$0xf] }
  0xb3   :  { %1935 = vmatpush.bf16.msrb.mxu3 %v3634_v46  ;;  %v3170_v46 = vor.u32 %v3941_v33, %v3169_v30  ;;  %v3298_v48 = vor.u32 %v3973_v37, %v3297_v34  ;;  %v3426_v49 = vor.u32 %v4005_v40, %v3425_v39  ;;  %v3969_v56 = vld [vmem:[#allocation2 + $0x534] sm:$0xf0]  ;;  %v3537_v59 = vld [vmem:[#allocation2 + $0x728] sm:$0xf]  ;;  %v3123_v30 = vld [vmem:[#allocation2 + $0x3f8] sm:$0xf0] }
  0xb4   :  { %1891 = vmatmul.bf16.vlgmr.msra.gmra.mxu3 %v4234_v20  ;;  %1897 = vmatpush.bf16.msrb.mxu0 %v3234_v52  ;;  %v3281_v52 = vld [vmem:[#allocation2 + $0x528] sm:$0xf]  ;;  %v4033_v60 = vld [vmem:[#allocation2 + $0x734] sm:$0xf0]  ;;  %v2723_v37 = vld [vmem:[#allocation2 + $0xd8] sm:$0xf0] }
  0xb5   :  { %v3137_v63 = vld [vmem:[#allocation2 + $0x408] sm:$0xf]  ;;  %v3965_v4 = vld [vmem:[#allocation2 + $0x514] sm:$0xf0]  ;;  %v3538_v7 = vor.u32 %v4033_v60, %v3537_v59  ;;  %v3859_v39 = vld [vmem:[#allocation2 + $0x1cc] sm:$0xf] }
  0xb6   :  { %1910 = vmatpush.bf16.msrb.mxu1 %v3362_v53  ;;  %1923 = vmatpush.bf16.msrb.mxu2 %v3490_v54  ;;  %v3265_v3 = vld [vmem:[#allocation2 + $0x508] sm:$0xf]  ;;  %v3997_v8 = vld [vmem:[#allocation2 + $0x614] sm:$0xf0]  ;;  %v3887_v59 = vld [vmem:[#allocation2 + $0x2ac] sm:$0xf] }
  0xb7   :  { %1936 = vmatpush.bf16.msrb.mxu3 %v3618_v58  ;;  %v4001_v58 = vld [vmem:[#allocation2 + $0x634] sm:$0xf0]  ;;  %v3393_v5 = vld [vmem:[#allocation2 + $0x608] sm:$0xf]  ;;  %v3266_v27 = vor.u32 %v3965_v4, %v3265_v3  ;;  %v2963_v60 = vld [vmem:[#allocation2 + $0x2b8] sm:$0xf0] }
  0xb8   :  { %1898 = vmatpush.bf16.msrb.mxu0 %v3218_v0  ;;  %v3933_v0 = vld [vmem:[#allocation2 + $0x414] sm:$0xf0]  ;;  %v3521_v9 = vld [vmem:[#allocation2 + $0x708] sm:$0xf]  ;;  %v3394_v28 = vor.u32 %v3997_v8, %v3393_v5  ;;  %v2691_v3 = vld [vmem:[#allocation2 + $0x98] sm:$0xf0] }
  0xb9   :  { %v4029_v10 = vld [vmem:[#allocation2 + $0x714] sm:$0xf0]  ;;  %v3138_v16 = vor.u32 %v3933_v0, %v3137_v63  ;;  %v3851_v4 = vld [vmem:[#allocation2 + $0x18c] sm:$0xf]  ;;  %v2947_v8 = vld [vmem:[#allocation2 + $0x298] sm:$0xf0] }
  0xba   :  { %1911 = vmatpush.bf16.msrb.mxu1 %v3346_v1  ;;  %1924 = vmatpush.bf16.msrb.mxu2 %v3474_v2  ;;  %v1645_v47 = vpop.f32.mrf.mxu0  ;;  %v1658_v54 = vpop.f32.mrf.mxu1  ;;  %v3282_v1 = vor.u32 %v3969_v56, %v3281_v52  ;;  %v3410_v2 = vor.u32 %v4001_v58, %v3409_v57  ;;  %v2854_v52 = vor.u32 %v3859_v39, %v2851_v43  ;;  %v3855_v56 = vld [vmem:[#allocation2 + $0x1ac] sm:$0xf]  ;;  %v2835_v58 = vld [vmem:[#allocation2 + $0x1b8] sm:$0xf0] }
  0xbb   :  { %1937 = vmatpush.bf16.msrb.mxu3 %v3602_v6  ;;  %v1646_v53 = vadd.f32 %v1645_v47, %v320_v35  ;;  %v1671_v6 = vpop.f32.mrf.mxu2  ;;  %v3923_v47 = vld [vmem:[#allocation2 + $0x3cc] sm:$0xf]  ;;  %v2838_v0 = vor.u32 %v3855_v56, %v2835_v58  ;;  %v2787_v43 = vld [vmem:[#allocation2 + $0x158] sm:$0xf0] }
  0xbc   :  { %1899 = vmatpush.bf16.msrb.mxu0 %v3202_v12  ;;  %v1684_v12 = vpop.f32.mrf.mxu3  ;;  %v3843_v39 = vld [vmem:[#allocation2 + $0x14c] sm:$0xf] }
  0xbd   :  { %v1659_v61 = vadd.f32 %v1658_v54, %v1646_v53  ;;  %v3823_v54 = vld [vmem:[#allocation2 + $0xac] sm:$0xf] }
  0xbe   :  { %1912 = vmatpush.bf16.msrb.mxu1 %v3330_v14  ;;  %1925 = vmatpush.bf16.msrb.mxu2 %v3458_v15  ;;  %v2739_v14 = vld [vmem:[#allocation2 + $0xf8] sm:$0xf0]  ;;  %v3863_v15 = vld [vmem:[#allocation2 + $0x1ec] sm:$0xf] }
  0xbf   :  { %1938 = vmatpush.bf16.msrb.mxu3 %v3586_v23  ;;  %v1672_v11 = vadd.f32 %v1671_v6, %v1659_v61  ;;  %v2995_v23 = vld [vmem:[#allocation2 + $0x2f8] sm:$0xf0]  ;;  %v2742_v33 = vor.u32 %v3831_v13, %v2739_v14  ;;  %v2870_v34 = vor.u32 %v3863_v15, %v2867_v17  ;;  %v3919_v61 = vld [vmem:[#allocation2 + $0x3ac] sm:$0xf] }
  0xc0   :  { %1900 = vmatpush.bf16.msrb.mxu0 %v3186_v29  ;;  %v3927_v29 = vld [vmem:[#allocation2 + $0x3ec] sm:$0xf]  ;;  %v2998_v35 = vor.u32 %v3895_v21, %v2995_v23  ;;  %v2819_v6 = vld [vmem:[#allocation2 + $0x198] sm:$0xf0] }
  0xc1   :  { %v4278_v24 = vadd.f32 %v1684_v12, %v1672_v11  ;;  %v3126_v40 = vor.u32 %v3927_v29, %v3123_v30  ;;  %v2822_v13 = vor.u32 %v3851_v4, %v2819_v6  ;;  %v3815_v15 = vld [vmem:[#allocation2 + $0x6c] sm:$0xf]  ;;  %v2931_v29 = vld [vmem:[#allocation2 + $0x278] sm:$0xf0] }
  0xc2   :  { %1913 = vmatpush.bf16.msrb.mxu1 %v3314_v31  ;;  %1926 = vmatpush.bf16.msrb.mxu2 %v3442_v32  ;;  %v1647_v25 = vpop.f32.mrf.mxu0  ;;  %v1660_v31 = vpop.f32.mrf.mxu1  ;;  %v3522_v32 = vor.u32 %v4029_v10, %v3521_v9  ;;  %v3915_v9 = vld [vmem:[#allocation2 + $0x38c] sm:$0xf]  ;;  %v3075_v10 = vld [vmem:[#allocation2 + $0x398] sm:$0xf0] }
  0xc3   :  { %1939 = vmatpush.bf16.msrb.mxu3 %v3570_v36  ;;  %v3827_v36 = vld [vmem:[#allocation2 + $0xcc] sm:$0xf]  ;;  %v3078_v25 = vor.u32 %v3915_v9, %v3075_v10  ;;  %v3059_v31 = vld [vmem:[#allocation2 + $0x378] sm:$0xf0] }
  0xc4   :  { %1901 = vmatpush.bf16.msrb.mxu0 %v3170_v46  ;;  %v2979_v46 = vld [vmem:[#allocation2 + $0x2d8] sm:$0xf0]  ;;  %v2726_v50 = vor.u32 %v3827_v36, %v2723_v37  ;;  %v1686_v51 = vpop.f32.mrf.mxu3  ;;  %v3847_v17 = vld [vmem:[#allocation2 + $0x16c] sm:$0xf] }
  0xc5   :  { %v2982_v53 = vor.u32 %v3891_v45, %v2979_v46  ;;  %v3911_v30 = vld [vmem:[#allocation2 + $0x36c] sm:$0xf]  ;;  %v2659_v37 = vld [vmem:[#allocation2 + $0x58] sm:$0xf0] }
  0xc6   :  { %1914 = vmatpush.bf16.msrb.mxu1 %v3298_v48  ;;  %1927 = vmatpush.bf16.msrb.mxu2 %v3426_v49  ;;  %v3107_v48 = vld [vmem:[#allocation2 + $0x3d8] sm:$0xf0]  ;;  %v1673_v49 = vpop.f32.mrf.mxu2  ;;  %v3811_v36 = vld [vmem:[#allocation2 + $0x4c] sm:$0xf] }
  0xc7   :  { %1940 = vmatpush.bf16.msrb.mxu3 %v3554_v55  ;;  %v2707_v55 = vld [vmem:[#allocation2 + $0xb8] sm:$0xf0]  ;;  %v3110_v57 = vor.u32 %v3923_v47, %v3107_v48  ;;  %v3875_v45 = vld [vmem:[#allocation2 + $0x24c] sm:$0xf]  ;;  %v2662_v51 = vor.u32 %v3811_v36, %v2659_v37 }
  0xc8   :  { %1902 = vmatpush.bf16.msrb.mxu0 %v3154_v62  ;;  %v3091_v62 = vld [vmem:[#allocation2 + $0x3b8] sm:$0xf0]  ;;  %v2710_v63 = vor.u32 %v3823_v54, %v2707_v55  ;;  %v3907_v49 = vld [vmem:[#allocation2 + $0x34c] sm:$0xf]  ;;  %v2790_v54 = vor.u32 %v3843_v39, %v2787_v43 }
  0xc9   :  { %v3094_v5 = vor.u32 %v3919_v61, %v3091_v62  ;;  %v2915_v46 = vld [vmem:[#allocation2 + $0x258] sm:$0xf0]  ;;  %v3807_v56 = vld [vmem:[#allocation2 + $0x2c] sm:$0xf] }
  0xca   :  { %1915 = vmatpush.bf16.msrb.mxu1 %v3282_v1  ;;  %1928 = vmatpush.bf16.msrb.mxu2 %v3410_v2  ;;  %v2966_v1 = vor.u32 %v3887_v59, %v2963_v60  ;;  %v3819_v2 = vld [vmem:[#allocation2 + $0x8c] sm:$0xf]  ;;  %v2918_v55 = vor.u32 %v3875_v45, %v2915_v46  ;;  %v2771_v61 = vld [vmem:[#allocation2 + $0x138] sm:$0xf0] }
  0xcb   :  { %1941 = vmatpush.bf16.msrb.mxu3 %v3538_v7  ;;  %v3883_v7 = vld [vmem:[#allocation2 + $0x28c] sm:$0xf]  ;;  %v2694_v11 = vor.u32 %v3819_v2, %v2691_v3  ;;  %v2627_v4 = vld [vmem:[#allocation2 + $0x18] sm:$0xf0] }
  0xcc   :  { %1903 = vmatpush.bf16.msrb.mxu0 %v3138_v16  ;;  %v2950_v14 = vor.u32 %v3883_v7, %v2947_v8  ;;  %v2675_v16 = vld [vmem:[#allocation2 + $0x78] sm:$0xf0]  ;;  %v3839_v58 = vld [vmem:[#allocation2 + $0x12c] sm:$0xf] }
  0xcd   :  { %v3871_v62 = vld [vmem:[#allocation2 + $0x22c] sm:$0xf]  ;;  %v2755_v8 = vld [vmem:[#allocation2 + $0x118] sm:$0xf0] }
  0xce   :  { %1916 = vmatpush.bf16.msrb.mxu1 %v3266_v27  ;;  %1929 = vmatpush.bf16.msrb.mxu2 %v3394_v28  ;;  %v1697_v12 = vpop.f32.mrf.mxu0  ;;  %v2803_v27 = vld [vmem:[#allocation2 + $0x178] sm:$0xf0]  ;;  %v3879_v28 = vld [vmem:[#allocation2 + $0x26c] sm:$0xf] }
  0xcf   :  { %1942 = vmatpush.bf16.msrb.mxu3 %v3522_v32  ;;  %1904 = vmatmul.bf16.vlgmr.msrb.gmra.mxu0 %v4250_v41  ;;  %v1698_v21 = vadd.f32 %v1697_v12, %v4278_v24  ;;  %v3062_v24 = vor.u32 %v3911_v30, %v3059_v31  ;;  %v3803_v3 = vld [vmem:[#allocation2 + $0xc] sm:$0xf]  ;;  %v2883_v12 = vld [vmem:[#allocation2 + $0x218] sm:$0xf0] }
  0xd0   :  { %1948 = vmatpush.bf16.msra.mxu0 %v2742_v33  ;;  %v1710_v23 = vpop.f32.mrf.mxu1  ;;  %v2678_v33 = vor.u32 %v3815_v15, %v2675_v16  ;;  %v3835_v7 = vld [vmem:[#allocation2 + $0x10c] sm:$0xf]  ;;  %v3235_v39 = vld [vmem:[#allocation2 + $0x4d8] sm:$0xf0] }
  0xd1   :  { %1930 = vmatmul.bf16.vlgmr.msrb.gmra.mxu2 %v4248_v38  ;;  %1917 = vmatmul.bf16.vlgmr.msrb.gmra.mxu1 %v4254_v44  ;;  %v1711_v32 = vadd.f32 %v1710_v23, %v1698_v21  ;;  %v3867_v9 = vld [vmem:[#allocation2 + $0x20c] sm:$0xf]  ;;  %v2630_v23 = vor.u32 %v3803_v3, %v2627_v4  ;;  %v3363_v43 = vld [vmem:[#allocation2 + $0x5d8] sm:$0xf0] }
  0xd2   :  { %1961 = vmatpush.bf16.msra.mxu1 %v2870_v34  ;;  %1974 = vmatpush.bf16.msra.mxu2 %v2998_v35  ;;  %v2806_v34 = vor.u32 %v3847_v17, %v2803_v27  ;;  %v2934_v35 = vor.u32 %v3879_v28, %v2931_v29  ;;  %v3959_v16 = vld [vmem:[#allocation2 + $0x4ec] sm:$0xf]  ;;  %v3251_v17 = vld [vmem:[#allocation2 + $0x4f8] sm:$0xf0]  ;;  %v2758_v29 = vor.u32 %v3835_v7, %v2755_v8 }
  0xd3   :  { %1987 = vmatpush.bf16.msra.mxu3 %v3126_v40  ;;  %v3991_v21 = vld [vmem:[#allocation2 + $0x5ec] sm:$0xf]  ;;  %v3507_v28 = vld [vmem:[#allocation2 + $0x6f8] sm:$0xf0]  ;;  %v2886_v30 = vor.u32 %v3867_v9, %v2883_v12 }
  0xd4   :  { %1943 = vmatmul.bf16.vlgmr.msrb.gmra.mxu3 %v4252_v42  ;;  %1949 = vmatpush.bf16.msra.mxu0 %v2726_v50  ;;  %v1723_v40 = vpop.f32.mrf.mxu2  ;;  %v3043_v50 = vld [vmem:[#allocation2 + $0x358] sm:$0xf0]  ;;  %v4023_v27 = vld [vmem:[#allocation2 + $0x6ec] sm:$0xf] }
  0xd5   :  { %v1724_v47 = vadd.f32 %v1723_v40, %v1711_v32  ;;  %v3046_v60 = vor.u32 %v3907_v49, %v3043_v50  ;;  %v4055_v31 = vld [vmem:[#allocation2 + $0x7ec] sm:$0xf]  ;;  %v3635_v32 = vld [vmem:[#allocation2 + $0x7f8] sm:$0xf0]  ;;  %v3510_v36 = vor.u32 %v4023_v27, %v3507_v28 }
  0xd6   :  { %1962 = vmatpush.bf16.msra.mxu1 %v2854_v52  ;;  %1975 = vmatpush.bf16.msra.mxu2 %v2982_v53  ;;  %v1699_v53 = vpop.f32.mrf.mxu0  ;;  %v3955_v37 = vld [vmem:[#allocation2 + $0x4cc] sm:$0xf]  ;;  %v3491_v46 = vld [vmem:[#allocation2 + $0x6d8] sm:$0xf0] }
  0xd7   :  { %1988 = vmatpush.bf16.msra.mxu3 %v3110_v57  ;;  %v1736_v48 = vpop.f32.mrf.mxu3  ;;  %v2643_v57 = vld [vmem:[#allocation2 + $0x38] sm:$0xf0]  ;;  %v3987_v40 = vld [vmem:[#allocation2 + $0x5cc] sm:$0xf]  ;;  %v3238_v49 = vor.u32 %v3955_v37, %v3235_v39 }
  0xd8   :  { %1950 = vmatpush.bf16.msra.mxu0 %v2710_v63  ;;  %v4285_v52 = vadd.f32 %v1736_v48, %v1724_v47  ;;  %v1712_v59 = vpop.f32.mrf.mxu1  ;;  %v2899_v63 = vld [vmem:[#allocation2 + $0x238] sm:$0xf0]  ;;  %v2646_v2 = vor.u32 %v3807_v56, %v2643_v57  ;;  %v4019_v45 = vld [vmem:[#allocation2 + $0x6cc] sm:$0xf]  ;;  %v3366_v50 = vor.u32 %v3987_v40, %v3363_v43 }
  0xd9   :  { %v2902_v6 = vor.u32 %v3871_v62, %v2899_v63  ;;  %v4051_v47 = vld [vmem:[#allocation2 + $0x7cc] sm:$0xf]  ;;  %v3619_v48 = vld [vmem:[#allocation2 + $0x7d8] sm:$0xf0] }
  0xda   :  { %1963 = vmatpush.bf16.msra.mxu1 %v2838_v0  ;;  %1976 = vmatpush.bf16.msra.mxu2 %v2966_v1  ;;  %v3903_v0 = vld [vmem:[#allocation2 + $0x32c] sm:$0xf]  ;;  %v3027_v1 = vld [vmem:[#allocation2 + $0x338] sm:$0xf0]  ;;  %v3622_v56 = vor.u32 %v4051_v47, %v3619_v48 }
  0xdb   :  { %1989 = vmatpush.bf16.msra.mxu3 %v3094_v5  ;;  %v2774_v5 = vor.u32 %v3839_v58, %v2771_v61  ;;  %v3951_v53 = vld [vmem:[#allocation2 + $0x4ac] sm:$0xf]  ;;  %v3347_v57 = vld [vmem:[#allocation2 + $0x5b8] sm:$0xf0] }
  0xdc   :  { %1951 = vmatpush.bf16.msra.mxu0 %v2694_v11  ;;  %v1725_v10 = vpop.f32.mrf.mxu2  ;;  %v3030_v11 = vor.u32 %v3903_v0, %v3027_v1  ;;  %v4015_v58 = vld [vmem:[#allocation2 + $0x6ac] sm:$0xf]  ;;  %v3475_v59 = vld [vmem:[#allocation2 + $0x6b8] sm:$0xf0] }
  0xdd   :  { %v3603_v61 = vld [vmem:[#allocation2 + $0x7b8] sm:$0xf0]  ;;  %v3478_v0 = vor.u32 %v4015_v58, %v3475_v59  ;;  %v3947_v1 = vld [vmem:[#allocation2 + $0x48c] sm:$0xf]  ;;  %v321_v58 = vperm.slane %v4275_v26, 1 }
  0xde   :  { %1964 = vmatpush.bf16.msra.mxu1 %v2822_v13  ;;  %1977 = vmatpush.bf16.msra.mxu2 %v2950_v14  ;;  %v3899_v13 = vld [vmem:[#allocation2 + $0x30c] sm:$0xf]  ;;  %v3011_v14 = vld [vmem:[#allocation2 + $0x318] sm:$0xf0] }
  0xdf   :  { %1990 = vmatpush.bf16.msra.mxu3 %v3078_v25  ;;  %v1738_v15 = vpop.f32.mrf.mxu3  ;;  %v3379_v25 = vld [vmem:[#allocation2 + $0x5f8] sm:$0xf0]  ;;  %v4043_v7 = vld [vmem:[#allocation2 + $0x78c] sm:$0xf] }
  0xe0   :  { %1952 = vmatpush.bf16.msra.mxu0 %v2678_v33  ;;  %v3014_v33 = vor.u32 %v3899_v13, %v3011_v14  ;;  %v3331_v4 = vld [vmem:[#allocation2 + $0x598] sm:$0xf0]  ;;  %v3943_v10 = vld [vmem:[#allocation2 + $0x46c] sm:$0xf] }
  0xe1   :  { %v3975_v12 = vld [vmem:[#allocation2 + $0x56c] sm:$0xf]  ;;  %v3315_v15 = vld [vmem:[#allocation2 + $0x578] sm:$0xf0] }
  0xe2   :  { %1965 = vmatpush.bf16.msra.mxu1 %v2806_v34  ;;  %1978 = vmatpush.bf16.msra.mxu2 %v2934_v35  ;;  %v3254_v34 = vor.u32 %v3959_v16, %v3251_v17  ;;  %v3382_v35 = vor.u32 %v3991_v21, %v3379_v25  ;;  %v4007_v16 = vld [vmem:[#allocation2 + $0x66c] sm:$0xf]  ;;  %v3443_v17 = vld [vmem:[#allocation2 + $0x678] sm:$0xf0]  ;;  %v3318_v27 = vor.u32 %v3975_v12, %v3315_v15 }
  0xe3   :  { %1991 = vmatpush.bf16.msra.mxu3 %v3062_v24  ;;  %v3638_v24 = vor.u32 %v4055_v31, %v3635_v32  ;;  %v4039_v21 = vld [vmem:[#allocation2 + $0x76c] sm:$0xf]  ;;  %v3446_v28 = vor.u32 %v4007_v16, %v3443_v17  ;;  %v3555_v40 = vld [vmem:[#allocation2 + $0x758] sm:$0xf0] }
  0xe4   :  { %1953 = vmatpush.bf16.msra.mxu0 %v2662_v51  ;;  %v3494_v51 = vor.u32 %v4019_v45, %v3491_v46  ;;  %v3971_v31 = vld [vmem:[#allocation2 + $0x54c] sm:$0xf]  ;;  %v3155_v48 = vld [vmem:[#allocation2 + $0x438] sm:$0xf0] }
  0xe5   :  { %v4035_v39 = vld [vmem:[#allocation2 + $0x74c] sm:$0xf]  ;;  %v4073_v12 = vld [vmem:[%s4483_s3 + $0x78] sm:$0xff] }
  0xe6   :  { %1966 = vmatpush.bf16.msra.mxu1 %v2790_v54  ;;  %1979 = vmatpush.bf16.msra.mxu2 %v2918_v55  ;;  %v3219_v54 = vld [vmem:[#allocation2 + $0x4b8] sm:$0xf0]  ;;  %v3983_v55 = vld [vmem:[#allocation2 + $0x5ac] sm:$0xf] }
  0xe7   :  { %1992 = vmatpush.bf16.msra.mxu3 %v3046_v60  ;;  %v4047_v60 = vld [vmem:[#allocation2 + $0x7ac] sm:$0xf]  ;;  %v3222_v62 = vor.u32 %v3951_v53, %v3219_v54  ;;  %v3350_v63 = vor.u32 %v3983_v55, %v3347_v57  ;;  %v3283_v53 = vld [vmem:[#allocation2 + $0x538] sm:$0xf0] }
  0xe8   :  { %1954 = vmatpush.bf16.msra.mxu0 %v2646_v2  ;;  %v3203_v2 = vld [vmem:[#allocation2 + $0x498] sm:$0xf0]  ;;  %v3606_v3 = vor.u32 %v4047_v60, %v3603_v61  ;;  %v3935_v47 = vld [vmem:[#allocation2 + $0x42c] sm:$0xf] }
  0xe9   :  { %v3999_v54 = vld [vmem:[#allocation2 + $0x62c] sm:$0xf]  ;;  %v3411_v55 = vld [vmem:[#allocation2 + $0x638] sm:$0xf0]  ;;  %v3158_v59 = vor.u32 %v3935_v47, %v3155_v48 }
  0xea   :  { %1967 = vmatpush.bf16.msra.mxu1 %v2774_v5  ;;  %1980 = vmatpush.bf16.msra.mxu2 %v2902_v6  ;;  %v4011_v5 = vld [vmem:[#allocation2 + $0x68c] sm:$0xf]  ;;  %v3459_v6 = vld [vmem:[#allocation2 + $0x698] sm:$0xf0]  ;;  %v3414_v61 = vor.u32 %v3999_v54, %v3411_v55 }
  0xeb   :  { %1993 = vmatpush.bf16.msra.mxu3 %v3030_v11  ;;  %v3462_v9 = vor.u32 %v4011_v5, %v3459_v6  ;;  %v3187_v11 = vld [vmem:[#allocation2 + $0x478] sm:$0xf0]  ;;  %v4027_v6 = vld [vmem:[#allocation2 + $0x70c] sm:$0xf] }
  0xec   :  { %1955 = vmatpush.bf16.msra.mxu0 %v2630_v23  ;;  %v4291_v8 = vpop.f32.mrf.mxu0  ;;  %v3571_v23 = vld [vmem:[#allocation2 + $0x778] sm:$0xf0]  ;;  %v3190_v25 = vor.u32 %v3943_v10, %v3187_v11  ;;  %v4063_v17 = vld [vmem:[%s4483_s3 + $0x28] sm:$0xff] }
  0xed   :  { %v3539_v57 = vld [vmem:[#allocation2 + $0x738] sm:$0xf0] }
  0xee   :  { %1968 = vmatpush.bf16.msra.mxu1 %v2758_v29  ;;  %1981 = vmatpush.bf16.msra.mxu2 %v2886_v30  ;;  %v4293_v13 = vpop.f32.mrf.mxu1  ;;  %v3939_v29 = vld [vmem:[#allocation2 + $0x44c] sm:$0xf]  ;;  %v3171_v30 = vld [vmem:[#allocation2 + $0x458] sm:$0xf0] }
  0xef   :  { %1994 = vmatpush.bf16.msra.mxu3 %v3014_v33  ;;  %1956 = vmatmul.bf16.vlgmr.msra.gmra.mxu0 %v4232_v19  ;;  %v3587_v19 = vld [vmem:[#allocation2 + $0x798] sm:$0xf0]  ;;  %v3574_v33 = vor.u32 %v4039_v21, %v3571_v23  ;;  %v4071_v21 = vld [vmem:[%s4483_s3 + $0x68] sm:$0xff] }
  0xf0   :  { %2000 = vmatpush.bf16.msrb.mxu0 %v3254_v34  ;;  %v3590_v14 = vor.u32 %v4043_v7, %v3587_v19  ;;  %v3299_v34 = vld [vmem:[#allocation2 + $0x558] sm:$0xf0]  ;;  %v1750_v19 = vadd.f32 %v4291_v8, %v321_v58  ;;  %v4064_v8 = vld [vmem:[%s4483_s3 + $0x30] sm:$0xff] }
  0xf1   :  { %1982 = vmatmul.bf16.vlgmr.msra.gmra.mxu2 %v4230_v18  ;;  %1969 = vmatmul.bf16.vlgmr.msra.gmra.mxu1 %v4236_v22  ;;  %v3979_v18 = vld [vmem:[#allocation2 + $0x58c] sm:$0xf]  ;;  %v3302_v45 = vor.u32 %v3971_v31, %v3299_v34  ;;  %v3523_v7 = vld [vmem:[#allocation2 + $0x718] sm:$0xf0]  ;;  %v4060_v34 = vld [vmem:[%s4483_s3 + $0x10] sm:$0xff] }
  0xf2   :  { %2013 = vmatpush.bf16.msrb.mxu1 %v3382_v35  ;;  %2026 = vmatpush.bf16.msrb.mxu2 %v3510_v36  ;;  %v3334_v22 = vor.u32 %v3979_v18, %v3331_v4  ;;  %v4003_v35 = vld [vmem:[#allocation2 + $0x64c] sm:$0xf]  ;;  %v3427_v36 = vld [vmem:[#allocation2 + $0x658] sm:$0xf0]  ;;  %v3526_v10 = vor.u32 %v4027_v6, %v3523_v7  ;;  %v4076_v58 = vld [vmem:[%s4483_s3 + $0x90] sm:$0xff] }
  0xf3   :  { %2039 = vmatpush.bf16.msrb.mxu3 %v3638_v24  ;;  %v3174_v24 = vor.u32 %v3939_v29, %v3171_v30  ;;  %v3430_v46 = vor.u32 %v4003_v35, %v3427_v36  ;;  %v3267_v18 = vld [vmem:[#allocation2 + $0x518] sm:$0xf0] }
  0xf4   :  { %1995 = vmatmul.bf16.vlgmr.msra.gmra.mxu3 %v4234_v20  ;;  %2001 = vmatpush.bf16.msrb.mxu0 %v3238_v49  ;;  %v3206_v20 = vor.u32 %v3947_v1, %v3203_v2  ;;  %v4295_v32 = vpop.f32.mrf.mxu2  ;;  %v1751_v43 = vpop.f32.mrf.mxu0  ;;  %v3967_v49 = vld [vmem:[#allocation2 + $0x52c] sm:$0xf]  ;;  %v3395_v4 = vld [vmem:[#allocation2 + $0x618] sm:$0xf0] }
  0xf5   :  { %v3286_v60 = vor.u32 %v3967_v49, %v3283_v53  ;;  %v4065_v11 = vld [vmem:[%s4483_s3 + $0x38] sm:$0xff]  ;;  %v4059_v43 = vld [vmem:[%s4483_s3 + $0x8] sm:$0xff]  ;;  %v4066_v53 = vld [vmem:[%s4483_s3 + $0x40] sm:$0xff] }
  0xf6   :  { %2014 = vmatpush.bf16.msrb.mxu1 %v3366_v50  ;;  %2027 = vmatpush.bf16.msrb.mxu2 %v3494_v51  ;;  %v1764_v50 = vpop.f32.mrf.mxu1  ;;  %v3558_v51 = vor.u32 %v4035_v39, %v3555_v40  ;;  %v4081_v15 = vld [vmem:[%s4483_s3 + $0xb8] sm:$0xff]  ;;  %v4068_v39 = vld [vmem:[%s4483_s3 + $0x50] sm:$0xff] }
  0xf7   :  { %2040 = vmatpush.bf16.msrb.mxu3 %v3622_v56  ;;  %v4297_v37 = vpop.f32.mrf.mxu3  ;;  %v4031_v56 = vld [vmem:[#allocation2 + $0x72c] sm:$0xf]  ;;  %v4069_v30 = vld [vmem:[%s4483_s3 + $0x58] sm:$0xff]  ;;  %v4058_v50 = vld [vmem:[%s4483_s3] sm:$0xff] }
  0xf8   :  { %2002 = vmatpush.bf16.msrb.mxu0 %v3222_v62  ;;  %v3931_v62 = vld [vmem:[#allocation2 + $0x40c] sm:$0xf]  ;;  %v3542_v2 = vor.u32 %v4031_v56, %v3539_v57 }
  0xfa   :  { %2015 = vmatpush.bf16.msrb.mxu1 %v3350_v63  ;;  %2028 = vmatpush.bf16.msrb.mxu2 %v3478_v0  ;;  %v3139_v63 = vld [vmem:[#allocation2 + $0x418] sm:$0xf0]  ;;  %v3963_v0 = vld [vmem:[#allocation2 + $0x50c] sm:$0xf] }
  0xfb   :  { %2041 = vmatpush.bf16.msrb.mxu3 %v3606_v3  ;;  %v3995_v3 = vld [vmem:[#allocation2 + $0x60c] sm:$0xf] }
  0xfc   :  { %2003 = vmatpush.bf16.msrb.mxu0 %v3206_v20  ;;  %v1777_v1 = vpop.f32.mrf.mxu2  ;;  %v3142_v20 = vor.u32 %v3931_v62, %v3139_v63  ;;  %v4074_v63 = vld [vmem:[%s4483_s3 + $0x80] sm:$0xff] }
  0xfe   :  { %2016 = vmatpush.bf16.msrb.mxu1 %v3334_v22  ;;  %2029 = vmatpush.bf16.msrb.mxu2 %v3462_v9  ;;  %v3270_v22 = vor.u32 %v3963_v0, %v3267_v18  ;;  %v3398_v9 = vor.u32 %v3995_v3, %v3395_v4  ;;  %v322_v0 = vperm.slane %v4275_v26, 2 }
  0xff   :  { %2042 = vmatpush.bf16.msrb.mxu3 %v3590_v14  ;;  %v1790_v5 = vpop.f32.mrf.mxu3  ;;  %v1763_v14 = vadd.f32 %v4293_v13, %v1750_v19  ;;  %v4072_v13 = vld [vmem:[%s4483_s3 + $0x70] sm:$0xff] }
 0x100   :  { %2004 = vmatpush.bf16.msrb.mxu0 %v3190_v25 }
 0x101   :  { %v1776_v16 = vadd.f32 %v4295_v32, %v1763_v14 }
 0x102   :  { %2017 = vmatpush.bf16.msrb.mxu1 %v3318_v27  ;;  %2030 = vmatpush.bf16.msrb.mxu2 %v3446_v28  ;;  %v4080_v27 = vld [vmem:[%s4483_s3 + $0xb0] sm:$0xff]  ;;  %v4061_v28 = vld [vmem:[%s4483_s3 + $0x18] sm:$0xff] }
 0x103   :  { %2043 = vmatpush.bf16.msrb.mxu3 %v3574_v33  ;;  %v4079_v33 = vld [vmem:[%s4483_s3 + $0xa8] sm:$0xff] }
 0x104   :  { %2005 = vmatpush.bf16.msrb.mxu0 %v3174_v24 }
 0x106   :  { %2018 = vmatpush.bf16.msrb.mxu1 %v3302_v45  ;;  %2031 = vmatpush.bf16.msrb.mxu2 %v3430_v46  ;;  %v4077_v45 = vld [vmem:[%s4483_s3 + $0x98] sm:$0xff]  ;;  %v4067_v46 = vld [vmem:[%s4483_s3 + $0x48] sm:$0xff] }
 0x107   :  { %2044 = vmatpush.bf16.msrb.mxu3 %v3558_v51  ;;  %v2052_v51 = vmax.f32 %v4285_v52, 0.0 }
 0x108   :  { %2006 = vmatpush.bf16.msrb.mxu0 %v3158_v59 }
 0x109   :  { %v2056_v55 = vpack.c.bf16 %v2052_v51, %v2052_v51 }
 0x10a   :  { %2019 = vmatpush.bf16.msrb.mxu1 %v3286_v60  ;;  %2032 = vmatpush.bf16.msrb.mxu2 %v3414_v61  ;;  %v4075_v60 = vld [vmem:[%s4483_s3 + $0x88] sm:$0xff] }
 0x10b   :  { %2045 = vmatpush.bf16.msrb.mxu3 %v3542_v2 }
 0x10c   :  { %2007 = vmatpush.bf16.msrb.mxu0 %v3142_v20 }
 0x10e   :  { %2020 = vmatpush.bf16.msrb.mxu1 %v3270_v22  ;;  %2033 = vmatpush.bf16.msrb.mxu2 %v3398_v9  ;;  %v1814_v25 = vpop.f32.mrf.mxu1 }
 0x10f   :  { %2046 = vmatpush.bf16.msrb.mxu3 %v3526_v10  ;;  %2008 = vmatmul.bf16.vlgmr.msrb.gmra.mxu0 %v4250_v41  ;;  %v1789_v41 = vadd.f32 %v4297_v37, %v1776_v16  ;;  %v4078_v37 = vld [vmem:[%s4483_s3 + $0xa0] sm:$0xff] }
 0x110   :  { %2320 = vmatpush.bf16.msra.mxu0 %v4065_v11  ;;  %v4089_v11 = vld [vmem:[%s4483_s3 + $0xf8] sm:$0xff] }
 0x111   :  { %2021 = vmatmul.bf16.vlgmr.msrb.gmra.mxu1 %v4254_v44  ;;  %2034 = vmatmul.bf16.vlgmr.msrb.gmra.mxu2 %v4248_v38  ;;  %v4062_v38 = vld [vmem:[%s4483_s3 + $0x20] sm:$0xff]  ;;  %v1801_v44 = vpop.f32.mrf.mxu0 }
 0x112   :  { %2333 = vmatpush.bf16.msra.mxu1 %v4073_v12  ;;  %2047 = vmatmul.bf16.vlgmr.msrb.gmra.mxu3 %v4252_v42  ;;  %v4070_v42 = vld [vmem:[%s4483_s3 + $0x60] sm:$0xff]  ;;  %v1802_v23 = vadd.f32 %v1801_v44, %v1789_v41  ;;  %v4085_v44 = vld [vmem:[%s4483_s3 + $0xd8] sm:$0xff] }
 0x113   :  { %2346 = vmatpush.bf16.msra.mxu2 %v4081_v15  ;;  %2359 = vmatpush.bf16.msra.mxu3 %v4089_v11 }
 0x114   :  { %2321 = vmatpush.bf16.msra.mxu0 %v4064_v8  ;;  %v1815_v29 = vadd.f32 %v1814_v25, %v1802_v23  ;;  %v1827_v31 = vpop.f32.mrf.mxu2  ;;  %v4088_v8 = vld [vmem:[%s4483_s3 + $0xf0] sm:$0xff] }
 0x116   :  { %2334 = vmatpush.bf16.msra.mxu1 %v4072_v13  ;;  %v1828_v35 = vadd.f32 %v1827_v31, %v1815_v29  ;;  %v1816_v40 = vpop.f32.mrf.mxu1  ;;  %v4082_v31 = vld [vmem:[%s4483_s3 + $0xc0] sm:$0xff] }
 0x117   :  { %2347 = vmatpush.bf16.msra.mxu2 %v4080_v27  ;;  %v1840_v32 = vpop.f32.mrf.mxu3  ;;  %2360 = vmatpush.bf16.msra.mxu3 %v4088_v8  ;;  %v4083_v27 = vld [vmem:[%s4483_s3 + $0xc8] sm:$0xff] }
 0x118   :  { %2322 = vmatpush.bf16.msra.mxu0 %v4063_v17  ;;  %v1841_v24 = vadd.f32 %v1840_v32, %v1828_v35  ;;  %v4087_v17 = vld [vmem:[%s4483_s3 + $0xe8] sm:$0xff] }
 0x119   :  { %v1803_v36 = vpop.f32.mrf.mxu0 }
 0x11a   :  { %2335 = vmatpush.bf16.msra.mxu1 %v4071_v21  ;;  %v2053_v49 = vmax.f32 %v1841_v24, 0.0 }
 0x11b   :  { %2348 = vmatpush.bf16.msra.mxu2 %v4079_v33  ;;  %2361 = vmatpush.bf16.msra.mxu3 %v4087_v17  ;;  %v323_v33 = vperm.slane %v4275_v26, 3  ;;  %v4173_v17 = vmov 2131351028  }
 0x11c   :  { %2323 = vmatpush.bf16.msra.mxu0 %v4062_v38  ;;  %v1829_v47 = vpop.f32.mrf.mxu2  ;;  %v2057_v54 = vpack.c.bf16 %v2053_v49, %v2053_v49  ;;  %v4086_v38 = vld [vmem:[%s4483_s3 + $0xe0] sm:$0xff] }
 0x11e   :  { %2336 = vmatpush.bf16.msra.mxu1 %v4070_v42  ;;  %v4084_v42 = vld [vmem:[%s4483_s3 + $0xd0] sm:$0xff] }
 0x11f   :  { %2349 = vmatpush.bf16.msra.mxu2 %v4078_v37  ;;  %v1842_v48 = vpop.f32.mrf.mxu3  ;;  %2362 = vmatpush.bf16.msra.mxu3 %v4086_v38  ;;  %v4174_v38 = vmov 2102212464  }
 0x120   :  { %2324 = vmatpush.bf16.msra.mxu0 %v4061_v28 }
 0x122   :  { %2337 = vmatpush.bf16.msra.mxu1 %v4069_v30 }
 0x123   :  { %2350 = vmatpush.bf16.msra.mxu2 %v4077_v45  ;;  %2363 = vmatpush.bf16.msra.mxu3 %v4085_v44 }
 0x124   :  { %2325 = vmatpush.bf16.msra.mxu0 %v4060_v34 }
 0x126   :  { %2338 = vmatpush.bf16.msra.mxu1 %v4068_v39 }
 0x127   :  { %2351 = vmatpush.bf16.msra.mxu2 %v4076_v58  ;;  %2364 = vmatpush.bf16.msra.mxu3 %v4084_v42 }
 0x128   :  { %2326 = vmatpush.bf16.msra.mxu0 %v4059_v43 }
 0x12a   :  { %2339 = vmatpush.bf16.msra.mxu1 %v4067_v46 }
 0x12b   :  { %2352 = vmatpush.bf16.msra.mxu2 %v4075_v60  ;;  %2365 = vmatpush.bf16.msra.mxu3 %v4083_v27 }
 0x12c   :  { %2327 = vmatpush.bf16.msra.mxu0 %v4058_v50  ;;  %v1853_v56 = vpop.f32.mrf.mxu0 }
 0x12d   :  { %v1854_v18 = vadd.f32 %v1853_v56, %v322_v0 }
 0x12e   :  { %2340 = vmatpush.bf16.msra.mxu1 %v4066_v53  ;;  %v1866_v57 = vpop.f32.mrf.mxu1 }
 0x12f   :  { %2328 = vmatmul.bf16.vlgmr.msra.gmra.mxu0 %v2056_v55  ;;  %2353 = vmatpush.bf16.msra.mxu2 %v4074_v63  ;;  %v1867_v3 = vadd.f32 %v1866_v57, %v1854_v18  ;;  %v4111_v57 = vld [vmem:[%s4484_s4] ss:$0 sm:$0xff] }
 0x130   :  { %2366 = vmatpush.bf16.msra.mxu3 %v4082_v31 }
 0x131   :  { %2341 = vmatmul.bf16.vlgmr.msra.gmra.mxu1 %v2057_v54 }
 0x134   :  { %v1879_v59 = vpop.f32.mrf.mxu2  ;;  %v1855_v61 = vpop.f32.mrf.mxu0 }
 0x135   :  { %v1880_v4 = vadd.f32 %v1879_v59, %v1867_v3 }
 0x136   :  { %v1868_v62 = vpop.f32.mrf.mxu1 }
 0x137   :  { %v1892_v52 = vpop.f32.mrf.mxu3 }
 0x138   :  { %v1893_v5 = vadd.f32 %v1892_v52, %v1880_v4 }
 0x13c   :  { %v1881_v1 = vpop.f32.mrf.mxu2 }
 0x13f   :  { %v1894_v2 = vpop.f32.mrf.mxu3 }
 0x14c   :  { %v1905_v6 = vpop.f32.mrf.mxu0 }
 0x14d   :  { %v1906_v7 = vadd.f32 %v1905_v6, %v1893_v5 }
 0x14e   :  { %v1918_v19 = vpop.f32.mrf.mxu1 }
 0x14f   :  { %v1919_v20 = vadd.f32 %v1918_v19, %v1906_v7 }
 0x154   :  { %v1931_v22 = vpop.f32.mrf.mxu2  ;;  %v1907_v14 = vpop.f32.mrf.mxu0 }
 0x155   :  { %v1932_v9 = vadd.f32 %v1931_v22, %v1919_v20  ;;  %v4171_v14 = vmov 683565275  }
 0x156   :  { %v1920_v15 = vpop.f32.mrf.mxu1 }
 0x157   :  { %v1944_v10 = vpop.f32.mrf.mxu3  ;;  %v4172_v15 = vmov 2475754826  }
 0x158   :  { %v1945_v12 = vadd.f32 %v1944_v10, %v1932_v9 }
 0x15a   :  { %v2054_v13 = vmax.f32 %v1945_v12, 0.0 }
 0x15c   :  { %v2058_v16 = vpack.c.bf16 %v2054_v13, %v2054_v13  ;;  %v1933_v41 = vpop.f32.mrf.mxu2 }
 0x15e   :  { %2354 = vmatmul.bf16.vlgmr.msra.gmra.mxu2 %v2058_v16 }
 0x15f   :  { %v1946_v21 = vpop.f32.mrf.mxu3 }
 0x16c   :  { %v1957_v23 = vpop.f32.mrf.mxu0 }
 0x16d   :  { %v1958_v36 = vadd.f32 %v1957_v23, %v323_v33  ;;  %v4175_v23 = vmov 920167782  }
 0x16e   :  { %v1970_v25 = vpop.f32.mrf.mxu1 }
 0x16f   :  { %v1971_v37 = vadd.f32 %v1970_v25, %v1958_v36 }
 0x174   :  { %v1983_v28 = vpop.f32.mrf.mxu2  ;;  %v1959_v30 = vpop.f32.mrf.mxu0 }
 0x175   :  { %v1984_v39 = vadd.f32 %v1983_v28, %v1971_v37  ;;  %v4176_v28 = vmov 1326507024  }
 0x176   :  { %v1972_v32 = vpop.f32.mrf.mxu1 }
 0x177   :  { %v1996_v29 = vpop.f32.mrf.mxu3 }
 0x178   :  { %v1997_v40 = vadd.f32 %v1996_v29, %v1984_v39 }
 0x17c   :  { %v1985_v34 = vpop.f32.mrf.mxu2 }
 0x17f   :  { %v1998_v35 = vpop.f32.mrf.mxu3 }
 0x18c   :  { %v2009_v24 = vpop.f32.mrf.mxu0 }
 0x18d   :  { %v2010_v45 = vadd.f32 %v2009_v24, %v1997_v40 }
 0x18e   :  { %v2022_v43 = vpop.f32.mrf.mxu1 }
 0x18f   :  { %v2023_v46 = vadd.f32 %v2022_v43, %v2010_v45 }
 0x194   :  { %v2035_v47 = vpop.f32.mrf.mxu2  ;;  %v2011_v50 = vpop.f32.mrf.mxu0 }
 0x195   :  { %v2036_v48 = vadd.f32 %v2035_v47, %v2023_v46  ;;  %v2048_v49 = vpop.f32.mrf.mxu3 }
 0x196   :  { %v2024_v51 = vpop.f32.mrf.mxu1 }
 0x197   :  { %v2049_v53 = vadd.f32 %v2048_v49, %v2036_v48 }
 0x199   :  { %v2055_v54 = vmax.f32 %v2049_v53, 0.0 }
 0x19b   :  { %v2059_v55 = vpack.c.bf16 %v2055_v54, %v2055_v54 }
 0x19c   :  { %v2037_v56 = vpop.f32.mrf.mxu2 }
 0x19d   :  { %v2050_v26 = vpop.f32.mrf.mxu3  ;;  %2367 = vmatmul.bf16.vlgmr.msra.gmra.mxu3 %v2059_v55 }
 0x1ac   :  { %v2329_v58 = vpop.f32.mrf.mxu0 }
 0x1ad   :  { %v2330_v59 = vadd.f32 %v4111_v57, %v2329_v58 }
 0x1ae   :  { %v2342_v52 = vpop.f32.mrf.mxu1 }
 0x1af   :  { %v2343_v60 = vadd.f32 %v2342_v52, %v2330_v59 }
 0x1b4   :  { %v2331_v61 = vpop.f32.mrf.mxu0 }
 0x1b6   :  { %v2344_v62 = vpop.f32.mrf.mxu1 }
 0x1e1   :  { %v2355_v63 = vpop.f32.mrf.mxu2 }
 0x1e2   :  { %v2356_v1 = vadd.f32 %v2355_v63, %v2343_v60 }
 0x1e9   :  { %v2357_v0 = vpop.f32.mrf.mxu2 }
 0x1ea   :  { %v4177_v0 = vmov 0  }
 0x220   :  { %v2368_v2 = vpop.f32.mrf.mxu3 }
 0x221   :  { %v4410_v18 = vadd.f32 %v2368_v2, %v2356_v1 }
 0x223   :  { %v2375_v3 = vand.u32 2139095040, %v4410_v18  ;;  %v2372_v6 = vand.u32 2147483647, %v4410_v18  ;;  %vm2374_vm12 = vcmp.lt.s32.totalorder %v4410_v18, 0 }
 0x225   :  { %v2376_v4 = vshrl.u32 %v2375_v3, 23  ;;  %v2379_v20 = vand.u32 8388607, %v2372_v6  ;;  %vm4464_vm13 = vcmp.le.f32.partialorder %v2372_v6, 0.7853982 }
 0x227   :  { %v3767_v5 = vadd.s32 4294967169, %v2376_v4  ;;  %v2380_v11 = vor.u32 8388608, %v2379_v20 }
 0x228   :  { %v2370_v7 = vpop.f32.mrf.mxu3 }
 0x229   :  { %v2382_v19 = vadd.s32 1, %v3767_v5  ;;  %v4427_v35 = vshll.u32 %v2380_v11, 8 }
 0x22b   :  { %vm2383_vm0 = vcmp.gt.s32.totalorder %v2382_v19, 0  ;;  %v2421_v47 = vand.u32 65535, %v4427_v35  ;;  %v2422_v48 = vshrl.u32 %v4427_v35, 16 }
 0x22c   :  { %v2384_v22 = vsel %vm2383_vm0, %v2382_v19, 0 }
 0x22d   :  { %v2386_v9 = vand.u32 31, %v2384_v22  ;;  %v4418_v12 = vshrl.u32 %v2384_v22, 5 }
 0x22f   :  { %v4416_v10 = vsub.s32 32, %v2386_v9  ;;  %v2389_v8 = vshll.u32 %v4171_v14, %v2386_v9  ;;  %v2392_v13 = vshll.u32 %v4172_v15, %v2386_v9  ;;  %v2395_v21 = vshll.u32 %v4173_v17, %v2386_v9 }
 0x230   :  { %v2398_v42 = vshll.u32 %v4174_v38, %v2386_v9  ;;  %v2401_v27 = vshll.u32 %v4175_v23, %v2386_v9  ;;  %vm2404_vm1 = vcmp.lt.s32.totalorder %v4418_v12, 1  ;;  %vm2407_vm2 = vcmp.lt.s32.totalorder %v4418_v12, 4 }
 0x231   :  { %v2390_v16 = vshrl.u32 %v4172_v15, %v4416_v10  ;;  %v2393_v41 = vshrl.u32 %v4173_v17, %v4416_v10  ;;  %v2396_v44 = vshrl.u32 %v4174_v38, %v4416_v10  ;;  %v2399_v25 = vshrl.u32 %v4175_v23, %v4416_v10 }
 0x232   :  { %v2402_v29 = vshrl.u32 %v4176_v28, %v4416_v10  ;;  %vm2406_vm3 = vcmp.lt.s32.totalorder %v4418_v12, 3  ;;  %vm2405_vm4 = vcmp.lt.s32.totalorder %v4418_v12, 2  ;;  %v2388_v22 = vshrl.u32 %v4171_v14, %v4416_v10 }
 0x233   :  { %v2391_v30 = vor.u32 %v2390_v16, %v2389_v8  ;;  %v2394_v31 = vor.u32 %v2393_v41, %v2392_v13  ;;  %v2397_v32 = vor.u32 %v2396_v44, %v2395_v21  ;;  %v2400_v33 = vor.u32 %v2399_v25, %v2398_v42  ;;  %v4097_v25 = vld [vmem:[#allocation4 + $0x38] sm:$0xff] }
 0x234   :  { %v2403_v34 = vor.u32 %v2402_v29, %v2401_v27  ;;  %2595 = vmatpush.bf16.msrb.mxu0 %v4097_v25  ;;  %v4096_v29 = vld [vmem:[#allocation4 + $0x30] sm:$0xff] }
 0x235   :  { %v2412_v36 = vsel %vm2404_vm1, %v2391_v30, %v2394_v31  ;;  %v2416_v37 = vsel %vm2404_vm1, %v2394_v31, %v2397_v32  ;;  %v2413_v39 = vsel %vm2407_vm2, %v2400_v33, 920167782  ;;  %v2409_v7 = vsel %vm2407_vm2, %v2397_v32, 2102212464 }
 0x236   :  { %v2417_v40 = vsel %vm2407_vm2, %v2403_v34, 1326507024  ;;  %v2414_v24 = vsel %vm2406_vm3, %v2397_v32, %v2413_v39  ;;  %v2408_v16 = vsel %vm2404_vm1, %v2388_v22, %v2391_v30  ;;  %v2410_v17 = vsel %vm2406_vm3, %v2394_v31, %v2409_v7 }
 0x237   :  { %v2418_v43 = vsel %vm2406_vm3, %v2400_v33, %v2417_v40  ;;  %v2415_v45 = vsel %vm2405_vm4, %v2412_v36, %v2414_v24  ;;  %v2411_v10 = vsel %vm2405_vm4, %v2408_v16, %v2410_v17  ;;  %v4095_v33 = vld [vmem:[#allocation4 + $0x28] sm:$0xff]  ;;  %v4093_v40 = vld [vmem:[#allocation4 + $0x18] sm:$0xff]  ;;  %vm2515_vm1 = vweird.f32 %v4410_v18 }
 0x238   :  { %v2419_v46 = vsel %vm2405_vm4, %v2416_v37, %v2418_v43  ;;  %v2445_v51 = vand.u32 65535, %v2415_v45  ;;  %v2446_v53 = vshrl.u32 %v2415_v45, 16  ;;  %v2465_v28 = vmul.u32 %v4427_v35, %v2411_v10  ;;  %2596 = vmatpush.bf16.msrb.mxu0 %v4096_v29  ;;  %v4094_v37 = vld [vmem:[#allocation4 + $0x20] sm:$0xff]  ;;  %v4092_v45 = vld [vmem:[#allocation4 + $0x10] sm:$0xff] }
 0x239   :  { %v2423_v49 = vand.u32 65535, %v2419_v46  ;;  %v2424_v50 = vshrl.u32 %v2419_v46, 16  ;;  %v4091_v46 = vld [vmem:[#allocation4 + $0x8] sm:$0xff]  ;;  %v4112_v10 = vld [vmem:[%s4486_s6] ss:$0 sm:$0xff] }
 0x23a   :  { %v2448_v56 = vmul.u32 %v2446_v53, %v2421_v47  ;;  %v2449_v26 = vmul.u32 %v2445_v51, %v2422_v48  ;;  %v2447_v52 = vmul.u32 %v2445_v51, %v2421_v47  ;;  %v2450_v63 = vmul.u32 %v2446_v53, %v2422_v48  ;;  %v4090_v51 = vld [vmem:[#allocation4] sm:$0xff] }
 0x23b   :  { %v2426_v54 = vmul.u32 %v2424_v50, %v2421_v47  ;;  %v2427_v55 = vmul.u32 %v2423_v49, %v2422_v48  ;;  %v2425_v57 = vmul.u32 %v2423_v49, %v2421_v47  ;;  %v2428_v59 = vmul.u32 %v2424_v50, %v2422_v48 }
 0x23c   :  { %v2451_v60 = vshll.u32 %v2448_v56, 16  ;;  %v2453_v2 = vshll.u32 %v2449_v26, 16  ;;  %v2452_v15 = vshrl.u32 %v2448_v56, 16  ;;  %v2454_v38 = vshrl.u32 %v2449_v26, 16  ;;  %2597 = vmatpush.bf16.msrb.mxu0 %v4095_v33 }
 0x23d   :  { %v2429_v58 = vshll.u32 %v2426_v54, 16  ;;  %v2431_v61 = vshll.u32 %v2427_v55, 16  ;;  %v2430_v9 = vshrl.u32 %v2426_v54, 16  ;;  %v2432_v41 = vshrl.u32 %v2427_v55, 16 }
 0x23e   :  { %vm2455_vm6 = vc.u32 %v2447_v52, %v2451_v60  ;;  %v2457_v3 = vadd.s32 %v2451_v60, %v2447_v52 }
 0x23f   :  { %vm2433_vm5 = vc.u32 %v2425_v57, %v2429_v58  ;;  %v2435_v62 = vadd.s32 %v2429_v58, %v2425_v57  ;;  %v2456_v5 = vsel %vm2455_vm6, 1, %v4177_v0 }
 0x240   :  { %v2434_v1 = vsel %vm2433_vm5, 1, %v4177_v0  ;;  %v2458_v20 = vadd.s32 %v2456_v5, %v2450_v63  ;;  %vm2459_vm8 = vc.u32 %v2457_v3, %v2453_v2  ;;  %v2461_v23 = vadd.s32 %v2457_v3, %v2453_v2  ;;  %2598 = vmatpush.bf16.msrb.mxu0 %v4094_v37 }
 0x241   :  { %v2436_v4 = vadd.s32 %v2434_v1, %v2428_v59  ;;  %vm2437_vm7 = vc.u32 %v2435_v62, %v2431_v61  ;;  %v2460_v8 = vsel %vm2459_vm8, 1, %v4177_v0 }
 0x242   :  { %v2438_v19 = vsel %vm2437_vm7, 1, %v4177_v0  ;;  %v2462_v13 = vadd.s32 %v2460_v8, %v2458_v20 }
 0x243   :  { %v2440_v11 = vadd.s32 %v2438_v19, %v2436_v4 }
 0x244   :  { %v2463_v44 = vadd.s32 %v2462_v13, %v2452_v15  ;;  %2599 = vmatpush.bf16.msrb.mxu0 %v4093_v40 }
 0x245   :  { %v2441_v21 = vadd.s32 %v2440_v11, %v2430_v9 }
 0x246   :  { %v2464_v14 = vadd.s32 %v2463_v44, %v2454_v38 }
 0x247   :  { %v2442_v42 = vadd.s32 %v2441_v21, %v2432_v41 }
 0x248   :  { %v2468_v27 = vadd.s32 1, %v2464_v14  ;;  %2600 = vmatpush.bf16.msrb.mxu0 %v4092_v45 }
 0x249   :  { %vm2467_vm9 = vc.u32 %v2442_v42, %v2461_v23  ;;  %v2466_v48 = vadd.s32 %v2461_v23, %v2442_v42 }
 0x24a   :  { %v2469_v30 = vsel %vm2467_vm9, %v2468_v27, %v2464_v14 }
 0x24b   :  { %v2470_v32 = vadd.s32 %v2469_v30, %v2465_v28 }
 0x24c   :  { %2601 = vmatpush.bf16.msrb.mxu0 %v4091_v46 }
 0x24d   :  { %v2471_v31 = vadd.s32 536870912, %v2470_v32 }
 0x24f   :  { %v2472_v34 = vshrl.u32 %v2471_v31, 30 }
 0x250   :  { %2602 = vmatpush.bf16.msrb.mxu0 %v4090_v51 }
 0x251   :  { %v2473_v36 = vshll.u32 %v2472_v34, 30  ;;  %v2496_v3 = vsub.s32 4, %v2472_v34 }
 0x253   :  { %v2474_v39 = vsub.s32 %v2470_v32, %v2473_v36  ;;  %v2497_v20 = vsel %vm2374_vm12, %v2496_v3, %v2472_v34 }
 0x254   :  { %v2499_v11 = vsel %vm4464_vm13, 0, %v2497_v20 }
 0x255   :  { %vm2475_vm10 = vcmp.lt.s32.totalorder %v2474_v39, 0  ;;  %v2476_v12 = vsub.s32 0, %v2474_v39  ;;  %v2516_v16 = vand.u32 3, %v2499_v11 }
 0x257   :  { %v2477_v24 = vsel %vm2475_vm10, %v2476_v12, %v2474_v39  ;;  %vm2518_vm14 = vcmp.eq.s32.totalorder %v2516_v16, 0  ;;  %vm2521_vm15 = vcmp.eq.s32.totalorder %v2516_v16, 2  ;;  %vm2517_vm0 = vcmp.lt.s32.totalorder %v2516_v16, 2 }
 0x258   :  { %v2478_v43 = vclz %v2477_v24 }
 0x25a   :  { %v3768_v35 = vadd.s32 4294967294, %v2478_v43 }
 0x25c   :  { %vm3769_vm11 = vcmp.lt.s32.totalorder %v3768_v35, 0 }
 0x25d   :  { %v2481_v47 = vsel %vm3769_vm11, 0, %v3768_v35 }
 0x25e   :  { %v2482_v49 = vsub.s32 32, %v2481_v47  ;;  %v2486_v50 = vsub.s32 4294967266, %v2481_v47  ;;  %v2483_v53 = vshll.u32 %v2474_v39, %v2481_v47 }
 0x260   :  { %v2484_v54 = vshrl.u32 %v2466_v48, %v2482_v49  ;;  %v2487_v55 = vadd.s32 127, %v2486_v50 }
 0x262   :  { %v2485_v56 = vor.u32 %v2484_v54, %v2483_v53  ;;  %v2488_v26 = vshll.u32 %v2487_v55, 23 }
 0x264   :  { %v2489_v57 = vor.u32 4788187, %v2488_v26  ;;  %v2492_v59 = vcvt.s32.f32 %v2485_v56 }
 0x266   :  { %v2490_v58 = vand.u32 2147483647, %v2489_v57 }
 0x268   :  { %v2493_v52 = vmul.f32 %v2492_v59, %v2490_v58 }
 0x26a   :  { %v2494_v60 = vxor.u32 2147483648, %v2493_v52 }
 0x26c   :  { %v2495_v62 = vsel %vm2374_vm12, %v2494_v60, %v2493_v52 }
 0x26d   :  { %v2498_v63 = vsel %vm4464_vm13, %v4410_v18, %v2495_v62 }
 0x26e   :  { %v2500_v0 = vmul.f32 %v2498_v63, %v2498_v63 }
 0x270   :  { %v2508_v1 = vmul.f32 -0.00019511016, %v2500_v0  ;;  %v2501_v2 = vmul.f32 -0.001358992, %v2500_v0 }
 0x272   :  { %v2509_v4 = vadd.f32 0.008332121, %v2508_v1  ;;  %v2502_v5 = vadd.f32 0.041655596, %v2501_v2 }
 0x274   :  { %v2510_v7 = vmul.f32 %v2509_v4, %v2500_v0  ;;  %v2503_v19 = vmul.f32 %v2502_v5, %v2500_v0 }
 0x276   :  { %v2511_v22 = vadd.f32 -0.16666654, %v2510_v7  ;;  %v2504_v9 = vadd.f32 -0.4999988, %v2503_v19 }
 0x278   :  { %v2512_v6 = vmul.f32 %v2511_v22, %v2500_v0  ;;  %v2505_v8 = vmul.f32 %v2504_v9, %v2500_v0 }
 0x27a   :  { %v2513_v15 = vadd.f32 1.0, %v2512_v6  ;;  %v2506_v13 = vadd.f32 1.0, %v2505_v8 }
 0x27c   :  { %v2514_v17 = vmul.f32 %v2513_v15, %v2498_v63  ;;  %v2522_v41 = vxor.u32 2147483648, %v2506_v13 }
 0x27e   :  { %v2519_v21 = vxor.u32 2147483648, %v2514_v17  ;;  %v2523_v44 = vsel %vm2521_vm15, %v2522_v41, %v2514_v17 }
 0x280   :  { %v2520_v38 = vsel %vm2518_vm14, %v2506_v13, %v2519_v21 }
 0x281   :  { %v2524_v42 = vsel %vm2517_vm0, %v2520_v38, %v2523_v44 }
 0x282   :  { %v2525_v23 = vsel %vm2515_vm1, nan, %v2524_v42 }
 0x283   :  { %v2526_v25 = vpack.c.bf16 %v2525_v23, %v2525_v23 }
 0x285   :  { %2603 = vmatmul.bf16.vlgmr.msrb.gmra.mxu0 %v2526_v25 }
 0x302   :  { %v2604_v14 = vpop.f32.mrf.mxu0 }
 0x303   :  { %v2605_v27 = vadd.f32 %v4112_v10, %v2604_v14 }
 0x305   :  { %2608 = vst [vmem:[%s4487_s7] sm:$0xff] %v2605_v27 }
 0x30a   :  { %v2606_v28 = vpop.f32.mrf.mxu0 }
 0x30b   :  { %2613 = vsyncpa [#allocation3], 1 }
 0x30c   :  { %2614 = vsyncpa [#allocation5], 1 }

</bundles_post_ra>
